<compile_context>
chip_gen: v5e
topology: v5e:2x2
jax: 0.10.0
libtpu: 0.0.40
codegen_flags: <defaults>
</compile_context>

<pallas_src>
import numpy as np
import jax
import jax.numpy as jnp
from jax.experimental import pallas as pl
from jax.experimental.pallas import tpu as pltpu


def _interp_matrix(in_size: int, out_size: int) -> np.ndarray:
    """Linear interpolation matrix M (out_size, in_size), align_corners=True:
    out = M @ in along that axis (matches F.interpolate semantics)."""
    M = np.zeros((out_size, in_size), dtype=np.float32)
    if in_size == 1:
        M[:, 0] = 1.0
        return M
    scale = (in_size - 1) / (out_size - 1)
    for o in range(out_size):
        src = o * scale
        i0 = min(int(np.floor(src)), in_size - 1)
        i1 = min(i0 + 1, in_size - 1)
        frac = src - i0
        M[o, i0] += 1.0 - frac
        M[o, i1] += frac
    return M


def _pick_tb(B: int, vol_in_bytes: int, vol_out_bytes: int) -> int:
    """Pick volumes-per-grid-step: ~2 MiB of live in+out block bytes per step
    (safe under every generation's scoped VMEM once double-buffering and f32
    intermediates are counted), keep >= 2 grid steps when possible (v7x has
    2 TCs), and make TB a divisor of B."""
    target = 2 * 1024 * 1024
    per_vol = max(1, vol_in_bytes + vol_out_bytes)
    tb = max(1, min(B, target // per_vol))
    if B >= 2:
        tb = min(tb, max(1, B // 2))
    while B % tb:
        tb -= 1
    return tb


def _make_kernel(TB, D, H, W, Do, Ho, Wo):
    def kernel(md_ref, mh_ref, mwt_ref, x_ref, o_ref):
        # x_ref: (TB, D*H, W); md: (Do, D); mh: (Ho, H); mwt: (W, Wo)
        x = x_ref[...].astype(jnp.float32)
        # --- W-axis interpolation: one tall 2-D MXU matmul (M = TB*D*H) ---
        tw = jnp.dot(x.reshape(TB * D * H, W), mwt_ref[...],
                     preferred_element_type=jnp.float32)            # (TB*D*H, Wo)
        # --- H-axis interpolation: batched matmul over TB*D volumes/slabs ---
        th = jnp.einsum('yh,bhx->byx', mh_ref[...],
                        tw.reshape(TB * D, H, Wo),
                        preferred_element_type=jnp.float32)         # (TB*D, Ho, Wo)
        # --- D-axis interpolation, producing a lane-dense Ho*Wo minor dim ---
        t4 = th.reshape(TB, D, Ho * Wo)
        out = jnp.einsum('zd,bdn->bzn', md_ref[...], t4,
                         preferred_element_type=jnp.float32)        # (TB, Do, Ho*Wo)
        o_ref[...] = out.astype(o_ref.dtype)
    return kernel


def unet_up_trilinear(x: jax.Array) -> jax.Array:
    """Equivalent of nn.Upsample(scale_factor=2, mode='trilinear',
    align_corners=True) applied to x of shape (N, C, D, H, W)."""
    N, C, D, H, W = x.shape
    Do, Ho, Wo = 2 * D, 2 * H, 2 * W
    B = N * C

    itemsize = jnp.dtype(x.dtype).itemsize
    vol_in_bytes = D * H * W * itemsize
    vol_out_bytes = Do * Ho * Wo * itemsize
    TB = _pick_tb(B, vol_in_bytes, vol_out_bytes)

    # Pre-flattened input (free metadata reshape): natural (sublane=D*H, lane=W).
    xb = x.reshape(B, D * H, W)

    md_j = jnp.asarray(_interp_matrix(D, Do))      # (Do, D)
    mh_j = jnp.asarray(_interp_matrix(H, Ho))      # (Ho, H)
    mwt_j = jnp.asarray(_interp_matrix(W, Wo).T)   # (W, Wo)

    flops = 2 * B * (D * H * W * Wo            # W-interp
                     + D * Ho * H * Wo         # H-interp
                     + Do * D * Ho * Wo)       # D-interp
    bytes_accessed = (B * D * H * W + B * Do * Ho * Wo) * itemsize \
        + 4 * (Do * D + Ho * H + W * Wo)

    out = pl.pallas_call(
        _make_kernel(TB, D, H, W, Do, Ho, Wo),
        out_shape=jax.ShapeDtypeStruct((B, Do, Ho * Wo), x.dtype),
        grid_spec=pltpu.PrefetchScalarGridSpec(
            num_scalar_prefetch=0,
            grid=(B // TB,),
            in_specs=[
                pl.BlockSpec((Do, D), lambda b: (0, 0)),
                pl.BlockSpec((Ho, H), lambda b: (0, 0)),
                pl.BlockSpec((W, Wo), lambda b: (0, 0)),
                pl.BlockSpec((TB, D * H, W), lambda b: (b, 0, 0)),
            ],
            out_specs=pl.BlockSpec((TB, Do, Ho * Wo), lambda b: (b, 0, 0)),
        ),
        compiler_params=pltpu.CompilerParams(
            dimension_semantics=("parallel",)),
        cost_estimate=pl.CostEstimate(
            flops=int(flops), transcendentals=0,
            bytes_accessed=int(bytes_accessed)),
    )(md_j, mh_j, mwt_j, xb)

    # Free metadata reshape back to NCDHW.
    return out.reshape(N, C, Do, Ho, Wo)


def _reference_upsample(x_np: np.ndarray) -> np.ndarray:
    """Independent numpy reference of trilinear upsample x2, align_corners=True."""
    N, C, D, H, W = x_np.shape
    Do, Ho, Wo = 2 * D, 2 * H, 2 * W

    def coords(n_in, n_out):
        if n_in == 1:
            i0 = np.zeros(n_out, dtype=np.int64)
            return i0, i0, np.zeros(n_out, dtype=np.float32)
        src = np.arange(n_out) * (n_in - 1) / (n_out - 1)
        i0 = np.minimum(np.floor(src).astype(np.int64), n_in - 1)
        i1 = np.minimum(i0 + 1, n_in - 1)
        frac = (src - i0).astype(np.float32)
        return i0, i1, frac

    d0, d1, fd = coords(D, Do)
    h0, h1, fh = coords(H, Ho)
    w0, w1, fw = coords(W, Wo)

    out = np.zeros((N, C, Do, Ho, Wo), dtype=np.float32)
    for (di, wd) in ((d0, 1.0 - fd), (d1, fd)):
        for (hi, wh) in ((h0, 1.0 - fh), (h1, fh)):
            for (wi, ww) in ((w0, 1.0 - fw), (w1, fw)):
                vals = x_np[:, :, di[:, None, None], hi[None, :, None],
                            wi[None, None, :]]
                weight = (wd[:, None, None] * wh[None, :, None]
                          * ww[None, None, :])
                out += vals * weight
    return out


if __name__ == "__main__":
    key = jax.random.PRNGKey(0)
    N, C, D, H, W = 2, 4, 4, 8, 8
    x = jax.random.normal(key, (N, C, D, H, W), dtype=jnp.float32)

    y = unet_up_trilinear(x)
    y = jax.block_until_ready(y)

    assert y.shape == (N, C, 2 * D, 2 * H, 2 * W), y.shape

    ref = _reference_upsample(np.asarray(x))
    np.testing.assert_allclose(np.asarray(y), ref, rtol=1e-5, atol=1e-5)

    print("KERNEL_OK")
</pallas_src>

<mosaic_0001>
module attributes {stable_mosaic.version = 11 : i64} {
  func.func @kernel(%arg0: i32, %arg1: memref<8x4xf32, #tpu.memory_space<vmem>>, %arg2: memref<16x8xf32, #tpu.memory_space<vmem>>, %arg3: memref<8x16xf32, #tpu.memory_space<vmem>>, %arg4: memref<4x32x8xf32, #tpu.memory_space<vmem>>, %arg5: memref<4x8x256xf32, #tpu.memory_space<vmem>>) attributes {dimension_semantics = [#tpu.dimension_semantics<parallel>], iteration_bounds = array<i64: 2>, scalar_prefetch = 0 : i64, scratch_operands = 0 : i64, tpu.core_type = #tpu.core_type<tc>, window_params = [{pipeline_mode = #tpu.pipeline_mode<synchronous>, transform_indices = @transform_0, window_bounds = array<i64: 8, 4>}, {pipeline_mode = #tpu.pipeline_mode<synchronous>, transform_indices = @transform_1, window_bounds = array<i64: 16, 8>}, {pipeline_mode = #tpu.pipeline_mode<synchronous>, transform_indices = @transform_2, window_bounds = array<i64: 8, 16>}, {transform_indices = @transform_3, window_bounds = array<i64: 4, 32, 8>}, {transform_indices = @transform_4, window_bounds = array<i64: 4, 8, 256>}]} {
    %c0 = arith.constant 0 : index
    %c0_0 = arith.constant 0 : index
    %c0_1 = arith.constant 0 : index
    %0 = vector.load %arg4[%c0, %c0_0, %c0_1] : memref<4x32x8xf32, #tpu.memory_space<vmem>>, vector<4x32x8xf32>
    %1 = vector.shape_cast %0 : vector<4x32x8xf32> to vector<128x8xf32>
    %c0_2 = arith.constant 0 : index
    %c0_3 = arith.constant 0 : index
    %2 = vector.load %arg3[%c0_2, %c0_3] : memref<8x16xf32, #tpu.memory_space<vmem>>, vector<8x16xf32>
    %cst = arith.constant dense<0.000000e+00> : vector<128x16xf32>
    %3 = tpu.matmul %1, %2, %cst {dimension_numbers = #tpu.dot_dimension_numbers<[1], [0], [0], [1], [0, 0, 1, 1], [], []>} : vector<128x8xf32>, vector<8x16xf32>, vector<128x16xf32> -> vector<128x16xf32>
    %c0_4 = arith.constant 0 : index
    %c0_5 = arith.constant 0 : index
    %4 = vector.load %arg2[%c0_4, %c0_5] : memref<16x8xf32, #tpu.memory_space<vmem>>, vector<16x8xf32>
    %5 = vector.shape_cast %3 : vector<128x16xf32> to vector<16x8x16xf32>
    "tpu.trace_start"() <{level = 10 : i32, message = "yh,bhx->byx"}> : () -> ()
    %cst_6 = arith.constant dense<0.000000e+00> : vector<16x16x16xf32>
    %6 = tpu.matmul %5, %4, %cst_6 {dimension_numbers = #tpu.dot_dimension_numbers<[1], [1], [0, 2], [0], [0, 0, 0, 2, 1, 0], [], []>} : vector<16x8x16xf32>, vector<16x8xf32>, vector<16x16x16xf32> -> vector<16x16x16xf32>
    %7 = tpu.transpose %6, [0, 2, 1] : vector<16x16x16xf32> -> vector<16x16x16xf32>
    "tpu.trace_stop"() : () -> ()
    %8 = vector.shape_cast %7 : vector<16x16x16xf32> to vector<4x4x256xf32>
    %c0_7 = arith.constant 0 : index
    %c0_8 = arith.constant 0 : index
    %9 = vector.load %arg1[%c0_7, %c0_8] : memref<8x4xf32, #tpu.memory_space<vmem>>, vector<8x4xf32>
    "tpu.trace_start"() <{level = 10 : i32, message = "zd,bdn->bzn"}> : () -> ()
    %cst_9 = arith.constant dense<0.000000e+00> : vector<4x256x8xf32>
    %10 = tpu.matmul %8, %9, %cst_9 {dimension_numbers = #tpu.dot_dimension_numbers<[1], [1], [0, 2], [0], [0, 0, 0, 2, 1, 0], [], []>} : vector<4x4x256xf32>, vector<8x4xf32>, vector<4x256x8xf32> -> vector<4x256x8xf32>
    %11 = tpu.transpose %10, [0, 2, 1] : vector<4x256x8xf32> -> vector<4x8x256xf32>
    "tpu.trace_stop"() : () -> ()
    %c0_10 = arith.constant 0 : index
    %c0_11 = arith.constant 0 : index
    %c0_12 = arith.constant 0 : index
    %12 = vector.load %arg5[%c0_10, %c0_11, %c0_12] : memref<4x8x256xf32, #tpu.memory_space<vmem>>, vector<4x8x256xf32>
    tpu.vector_store %arg5[%c0_10, %c0_11, %c0_12], %11 {strides = array<i32>} : memref<4x8x256xf32, #tpu.memory_space<vmem>>, vector<4x8x256xf32>,
    return
  }
  func.func @transform_0(%arg0: i32) -> (i32, i32) {
    %c0_i32 = arith.constant 0 : i32
    %c0_i32_0 = arith.constant 0 : i32
    %c0_i32_1 = arith.constant 0 : i32
    return %c0_i32, %c0_i32_0 : i32, i32
  }
  func.func @transform_1(%arg0: i32) -> (i32, i32) {
    %c0_i32 = arith.constant 0 : i32
    %c0_i32_0 = arith.constant 0 : i32
    %c0_i32_1 = arith.constant 0 : i32
    return %c0_i32, %c0_i32_0 : i32, i32
  }
  func.func @transform_2(%arg0: i32) -> (i32, i32) {
    %c0_i32 = arith.constant 0 : i32
    %c0_i32_0 = arith.constant 0 : i32
    %c0_i32_1 = arith.constant 0 : i32
    return %c0_i32, %c0_i32_0 : i32, i32
  }
  func.func @transform_3(%arg0: i32) -> (i32, i32, i32) {
    %c0_i32 = arith.constant 0 : i32
    %c0_i32_0 = arith.constant 0 : i32
    %c0_i32_1 = arith.constant 0 : i32
    return %arg0, %c0_i32, %c0_i32_0 : i32, i32, i32
  }
  func.func @transform_4(%arg0: i32) -> (i32, i32, i32) {
    %c0_i32 = arith.constant 0 : i32
    %c0_i32_0 = arith.constant 0 : i32
    %c0_i32_1 = arith.constant 0 : i32
    return %arg0, %c0_i32, %c0_i32_0 : i32, i32, i32
  }
}

</mosaic_0001>

<bundles_post_ra>
// kernel: tpu_custom_call.1
= control target key start
LH: loop header
LB: loop body
LE: loop exit
PB: predicated region body
PF: predicated region fallthrough
CT: control target
= control target key end

     0   :  { %9 = vsyncpa [#allocation3], 0  ;;  %s4990_s0 = inlined_call_operand.vmem [shape: f32[8,4], index: 0, kind: input, shape index: {}]   ;;  %s4991_s1 = inlined_call_operand.vmem [shape: f32[16,8], index: 1, kind: input, shape index: {}]   ;;  %s4992_s2 = inlined_call_operand.vmem [shape: f32[8,16], index: 2, kind: input, shape index: {}]   ;;  %s4993_s3 = inlined_call_operand.vmem [shape: f32[8,32,8], index: 3, kind: input, shape index: {}]   ;;  %s4994_s4 = inlined_call_operand.hbm [shape: f32[8,8,256], index: 4, kind: output, shape index: {}]  }
   0x1   :  { %11 = vsyncpa [#allocation3 + $0x1], 0  ;;  %s4047_s15 = smov 0   ;;  %s4049_s16 = smov 0  }
   0x2   :  { %s4051_s17 = smov 0   ;;  %s4053_s18 = smov 0  }
   0x3 LB: > { %s4068_s19 = sadd.s32 4294967295, %s4010_s18   ;;  %s3699_s20 = sadd.s32 4294967294, %s4010_s18   ;;  %s4010_s18 = sphi %s4053_s18, %s5000_s18   ;;  %s4006_s17 = sphi %s4051_s17, %s4999_s17   ;;  %s4002_s16 = sphi %s4049_s16, %s4998_s16   ;;  %s3998_s15 = sphi %s4047_s15, %s4997_s15  }
   0x4   : > { %s4072_s21 = sadd.s32 1, %s4010_s18   ;;  %s113_s22 = sadd.s32 1, %s4006_s17 }
   0x5   : > { %s110_s23 = ssub.s32 %s4010_s18, %s4072_s21  ;;  %p123_p0 = scmp.ne.s32.totalorder %s4006_s17, %s4002_s16 }
   0x6   : > { %p111_p1 = scmp.eq.s32.totalorder %s110_s23, 0  ;;  %p124_p2 = scmp.eq.s32.totalorder %s4068_s19, 1 }
   0x7   : > { %p129_p3 = scmp.ne.s32.totalorder %s4002_s16, %s3998_s15  ;;  %p130_p4 = scmp.eq.s32.totalorder %s3699_s20, 1 }
   0x8   : > { %s4083_s24 = scalar_select %p111_p1, %s4006_s17, %s113_s22  }
   0x9   : > { %p4085_p5 = por %p124_p2, %p123_p0  ;;  %p4089_p6 = por %p130_p4, %p129_p3 }
   0xa   : > { %p3702_p7 = scmp.ge.s32.totalorder %s4010_s18, 1  ;;  %p167_p8 = scmp.lt.s32.totalorder %s4010_s18, 3 }
   0xc   : > { %p168_p9 = pnand %p3702_p7, %p167_p8 }
   0xd   : > { %s3704_s29 = sshll.u32 (!%p168_p9), %s4068_s19, 2  ;;  %s4014_s12 = smov (!%p168_p9), 96  }
   0xe   : > { %171 = sbr.rel (%p168_p9) target bundleno = 2410 (0x96a), region = 36  ;;  %p195_p10 = scmp.lt.s32.totalorder (!%p168_p9), %s3704_s29, 7 }
   0xf   : > { %s4015_s13 = smov (!%p168_p9), 64   ;;  %s4016_s14 = smov (!%p168_p9), 80  }
  0x10   : > { %s4017_s20 = smov (!%p168_p9), 32   ;;  %s4018_s22 = smov (!%p168_p9), 112  }
  0x11   : > { %s4019_s23 = smov (!%p168_p9), 16   ;;  %s4020_s27 = smov (!%p168_p9), 48  }
  0x13   : > { %v218_v0 = vld [vmem:[%s4992_s2] sm:$0xff]  ;;  %s5002_s29 = smov (!%p195_p10, %s3704_s29), 7  ;;  %vm219_vm0 = vcmask 64512   ;;  %v334_v16 = vld [vmem:[%s4991_s1 + $0x8] sm:$0xff]  ;;  %vm1575_vm1 = vcmask 1047556   ;;  %vm2247_vm2 = vcmask 130048  }
  0x14   : > { %283 = vmatpush.msra.mxu0 %v218_v0  ;;  %3895 = vmatpush.msra.mxu1 %v218_v0  ;;  %s3892_s30 = sshll.u32 %s5002_s29, 5  ;;  %v333_v18 = vld [vmem:[%s4991_s1] sm:$0xff]  ;;  %vm2252_vm3 = vcmask 261120   ;;  %vm2257_vm4 = vcmask 392192   ;;  %vm2262_vm5 = vcmask 523264   ;;  %vm2267_vm6 = vcmask 654336  }
  0x15   : > { %s4102_s7 = scalar_lea.vmem %s4993_s3, %s3892_s30  ;;  %vm2272_vm7 = vcmask 785408   ;;  %vm2277_vm8 = vcmask 916480   ;;  %vm2567_vm9 = vcmask 31744   ;;  %s191_s30 = sand.u32 1, %s4002_s16  }
  0x16   : > { %v202_v1 = vld [vmem:[%s4102_s7] sm:$0xff]  ;;  %v207_v2 = vld [vmem:[%s4102_s7 + $0x28] sm:$0xff]  ;;  %v208_v4 = vld [vmem:[%s4102_s7 + $0x30] sm:$0xff]  ;;  %3723 = vmatpush.xpose.msk.msrb.mxu1 %vm219_vm0, %v334_v16  ;;  %s3703_s5 = sshll.u32 %s191_s30, 6 }
  0x17   : > { %3707 = vmatmul.msk.f32.vlgmr.msra.gmra.mxu0 %vm219_vm0, %v202_v1  ;;  %3712 = vmatmul.msk.f32.vlgmr.msra.gmra.mxu1 %vm219_vm0, %v207_v2  ;;  %v203_v3 = vld [vmem:[%s4102_s7 + $0x8] sm:$0xff]  ;;  %v204_v5 = vld [vmem:[%s4102_s7 + $0x10] sm:$0xff]  ;;  %v209_v6 = vld [vmem:[%s4102_s7 + $0x38] sm:$0xff]  ;;  %s193_s6 = scalar_lea.vmem [#allocation2], %s3703_s5 }
  0x18   : > { %v205_v7 = vld [vmem:[%s4102_s7 + $0x18] sm:$0xff]  ;;  %v210_v8 = vld [vmem:[%s4102_s7 + $0x40] sm:$0xff]  ;;  %v211_v17 = vld [vmem:[%s4102_s7 + $0x48] sm:$0xff]  ;;  %s3634_s11 = sshll.u32 %s193_s6, 4  ;;  %s3635_s11 = int_to_ptr.vmem [resolvable:$true] %s3634_s11 }
  0x19   : > { %v206_v9 = vld [vmem:[%s4102_s7 + $0x20] sm:$0xff]  ;;  %v212_v19 = vld [vmem:[%s4102_s7 + $0x50] sm:$0xff]  ;;  %v213_v22 = vld [vmem:[%s4102_s7 + $0x58] sm:$0xff] }
  0x1a   : > { %3724 = vmatpush.xpose.msk.msrb.mxu1 %vm219_vm0, %v333_v18  ;;  %v214_v24 = vld [vmem:[%s4102_s7 + $0x60] sm:$0xff]  ;;  %v215_v25 = vld [vmem:[%s4102_s7 + $0x68] sm:$0xff]  ;;  %v216_v26 = vld [vmem:[%s4102_s7 + $0x70] sm:$0xff]  ;;  %v4012_v18 = vmov 1983009808  }
  0x1b   : > { %v217_v27 = vld [vmem:[%s4102_s7 + $0x78] sm:$0xff]  ;;  %s3894_s7 = sshll.u32 %s4068_s19, 6 }
  0x1c   : > { %s3633_s10 = scalar_lea.hbm %s4994_s4, %s3894_s7 }
  0x1f   : > { %3708 = vmatmul.msk.f32.gmra.mxu0 %vm219_vm0, %v203_v3  ;;  %3713 = vmatmul.msk.f32.gmra.mxu1 %vm219_vm0, %v208_v4 }
  0x27   : > { %3709 = vmatmul.msk.f32.gmra.mxu0 %vm219_vm0, %v204_v5  ;;  %3714 = vmatmul.msk.f32.gmra.mxu1 %vm219_vm0, %v209_v6 }
  0x2f   : > { %3710 = vmatmul.msk.f32.gmra.mxu0 %vm219_vm0, %v205_v7  ;;  %3715 = vmatmul.msk.f32.gmra.mxu1 %vm219_vm0, %v210_v8 }
  0x37   : > { %3711 = vmatmul.msk.f32.gmra.mxu0 %vm219_vm0, %v206_v9  ;;  %3716 = vmatmul.msk.f32.gmra.mxu1 %vm219_vm0, %v211_v17 }
  0x3f   : > { %3717 = vmatmul.msk.f32.gmra.mxu1 %vm219_vm0, %v212_v19  ;;  %v1580_v19 = vunpack.c.l.s4 %v4012_v18 }
  0x47   : > { %3718 = vmatmul.msk.f32.gmra.mxu1 %vm219_vm0, %v213_v22 }
  0x4f   : > { %3719 = vmatmul.msk.f32.gmra.mxu1 %vm219_vm0, %v214_v24 }
  0x57   : > { %3720 = vmatmul.msk.f32.gmra.mxu1 %vm219_vm0, %v215_v25 }
  0x5f   : > { %3721 = vmatmul.msk.f32.gmra.mxu1 %vm219_vm0, %v216_v26 }
  0x67   : > { %3722 = vmatmul.msk.f32.gmra.mxu1 %vm219_vm0, %v217_v27 }
  0x94   : > { %v285_v10 = vpop.f32.mrf.mxu0  ;;  %v300_v11 = vpop.f32.mrf.mxu1 }
  0x95   : > { %335 = vxpose.xlu0.b32.start.end [1/1] (short) (narrow) %v285_v10, 16  ;;  %495 = vxpose.xlu2.b32.start.end [1/1] (short) (narrow) %v300_v11, 16 }
  0x9c   : > { %v288_v12 = vpop.f32.mrf.mxu0  ;;  %v303_v13 = vpop.f32.mrf.mxu1 }
  0xa4   : > { %v291_v14 = vpop.f32.mrf.mxu0  ;;  %v306_v15 = vpop.f32.mrf.mxu1 }
  0xa5   : > { %367 = vxpose.xlu0.b32.start.end [1/1] (short) (narrow) %v288_v12, 16  ;;  %399 = vxpose.xlu1.b32.start.end [1/1] (short) (narrow) %v291_v14, 16 }
  0xac   : > { %v309_v20 = vpop.f32.mrf.mxu1  ;;  %v294_v21 = vpop.f32.mrf.mxu0 }
  0xad   : > { %591 = vxpose.xlu2.b32.start.end [1/1] (short) (narrow) %v309_v20, 16 }
  0xb4   : > { %v297_v23 = vpop.f32.mrf.mxu0  ;;  %v312_v35 = vpop.f32.mrf.mxu1 }
  0xb5   : > { %527 = vxpose.xlu0.b32.start.end [1/1] (short) (narrow) %v303_v13, 16  ;;  %559 = vxpose.xlu1.b32.start.end [1/1] (short) (narrow) %v306_v15, 16 }
  0xbc   : > { %v315_v40 = vpop.f32.mrf.mxu1 }
  0xbd   : > { %463 = vxpose.xlu2.b32.start.end [1/1] (short) (narrow) %v297_v23, 16  ;;  %v4176_v23 = vunpack.c.0.s8 %v1580_v19 }
  0xc4   : > { %v318_v42 = vpop.f32.mrf.mxu1 }
  0xc5   : > { %431 = vxpose.xlu1.b32.start.end [1/1] (short) (narrow) %v294_v21, 16  ;;  %623 = vxpose.xlu0.b32.start.end [1/1] (short) (narrow) %v312_v35, 16 }
  0xcc   : > { %v321_v45 = vpop.f32.mrf.mxu1 }
  0xcd   : > { %687 = vxpose.xlu2.b32.start.end [1/1] (short) (narrow) %v318_v42, 16 }
  0xd4   : > { %v324_v47 = vpop.f32.mrf.mxu1 }
  0xd5   : > { %655 = vxpose.xlu1.b32.start.end [1/1] (short) (narrow) %v315_v40, 16  ;;  %719 = vxpose.xlu0.b32.start.end [1/1] (short) (narrow) %v321_v45, 16 }
  0xdc   : > { %v327_v49 = vpop.f32.mrf.mxu1 }
  0xdd   : > { %783 = vxpose.xlu2.b32.start.end [1/1] (short) (narrow) %v327_v49, 16 }
  0xe4   : > { %v330_v50 = vpop.f32.mrf.mxu1 }
  0xe5   : > { %751 = vxpose.xlu1.b32.start.end [1/1] (short) (narrow) %v324_v47, 16  ;;  %815 = vxpose.xlu0.b32.start.end [1/1] (short) (narrow) %v330_v50, 16 }
 0x12e   : > { %v511_v32 = vpop.trf.xlu2 }
 0x136   : > { %v512_v36 = vpop.trf.xlu2 }
 0x139   : > { %v351_v28 = vpop.trf.xlu0 }
 0x13a   : > { %3725 = vmatmul.msk.f32.vlgmr.msrb.gmra.mxu1 %vm219_vm0, %v351_v28  ;;  %v4013_v28 = vmov 1934713408  }
 0x141   : > { %v352_v29 = vpop.trf.xlu0 }
 0x142   : > { %3726 = vmatmul.msk.f32.gmra.mxu1 %vm219_vm0, %v352_v29  ;;  %v1604_v29 = vunpack.c.l.s4 %v4013_v28 }
 0x144   : > { %v4182_v35 = vunpack.c.0.s8 %v1604_v29 }
 0x146   : > { %v607_v39 = vpop.trf.xlu2 }
 0x149   : > { %v383_v30 = vpop.trf.xlu0  ;;  %v415_v31 = vpop.trf.xlu1 }
 0x14a   : > { %3727 = vmatmul.msk.f32.gmra.mxu1 %vm219_vm0, %v383_v30 }
 0x14e   : > { %v608_v43 = vpop.trf.xlu2 }
 0x151   : > { %v384_v33 = vpop.trf.xlu0  ;;  %v416_v34 = vpop.trf.xlu1 }
 0x152   : > { %3728 = vmatmul.msk.f32.gmra.mxu1 %vm219_vm0, %v384_v33 }
 0x156   : > { %v479_v46 = vpop.trf.xlu2 }
 0x159   : > { %v575_v37 = vpop.trf.xlu1  ;;  %v543_v51 = vpop.trf.xlu0 }
 0x15a   : > { %3729 = vmatmul.msk.f32.gmra.mxu1 %vm219_vm0, %v415_v31 }
 0x15e   : > { %v480_v48 = vpop.trf.xlu2 }
 0x161   : > { %v576_v38 = vpop.trf.xlu1  ;;  %v544_v52 = vpop.trf.xlu0 }
 0x162   : > { %3730 = vmatmul.msk.f32.gmra.mxu1 %vm219_vm0, %v416_v34 }
 0x166   : > { %v703_v6 = vpop.trf.xlu2 }
 0x169   : > { %v447_v41 = vpop.trf.xlu1  ;;  %v639_v62 = vpop.trf.xlu0 }
 0x16a   : > { %3731 = vmatmul.msk.f32.gmra.mxu1 %vm219_vm0, %v447_v41 }
 0x16e   : > { %v704_v8 = vpop.trf.xlu2 }
 0x171   : > { %v448_v44 = vpop.trf.xlu1  ;;  %v640_v0 = vpop.trf.xlu0 }
 0x172   : > { %3732 = vmatmul.msk.f32.gmra.mxu1 %vm219_vm0, %v448_v44 }
 0x176   : > { %v799_v13 = vpop.trf.xlu2 }
 0x179   : > { %v671_v2 = vpop.trf.xlu1  ;;  %v735_v9 = vpop.trf.xlu0 }
 0x17a   : > { %3733 = vmatmul.msk.f32.gmra.mxu1 %vm219_vm0, %v479_v46 }
 0x17e   : > { %v800_v14 = vpop.trf.xlu2 }
 0x181   : > { %v672_v4 = vpop.trf.xlu1  ;;  %v736_v10 = vpop.trf.xlu0 }
 0x182   : > { %3734 = vmatmul.msk.f32.gmra.mxu1 %vm219_vm0, %v480_v48 }
 0x189   : > { %v767_v11 = vpop.trf.xlu1  ;;  %v831_v15 = vpop.trf.xlu0 }
 0x18a   : > { %3735 = vmatmul.msk.f32.gmra.mxu1 %vm219_vm0, %v511_v32 }
 0x191   : > { %v768_v12 = vpop.trf.xlu1  ;;  %v832_v16 = vpop.trf.xlu0 }
 0x192   : > { %3736 = vmatmul.msk.f32.gmra.mxu1 %vm219_vm0, %v512_v36 }
 0x19a   : > { %3737 = vmatmul.msk.f32.gmra.mxu1 %vm219_vm0, %v543_v51 }
 0x1a2   : > { %3738 = vmatmul.msk.f32.gmra.mxu1 %vm219_vm0, %v544_v52 }
 0x1aa   : > { %3739 = vmatmul.msk.f32.gmra.mxu1 %vm219_vm0, %v575_v37 }
 0x1b2   : > { %3740 = vmatmul.msk.f32.gmra.mxu1 %vm219_vm0, %v576_v38 }
 0x1b7   : > { %v966_v53 = vpop.f32.mrf.mxu1 }
 0x1b8   : > { %1062 = vxpose.xlu1.b32.start [1/2] (short) (narrow) %v966_v53, 16 }
 0x1ba   : > { %3741 = vmatmul.msk.f32.gmra.mxu1 %vm219_vm0, %v607_v39 }
 0x1bf   : > { %v969_v54 = vpop.f32.mrf.mxu1 }
 0x1c0   : > { %1063 = vxpose.xlu1.b32.end [2/2] (short) (narrow) %v969_v54, 16 }
 0x1c2   : > { %3742 = vmatmul.msk.f32.gmra.mxu1 %vm219_vm0, %v608_v43 }
 0x1c7   : > { %v972_v55 = vpop.f32.mrf.mxu1 }
 0x1c8   : > { %1094 = vxpose.xlu2.b32.start [1/2] (short) (narrow) %v972_v55, 16 }
 0x1ca   : > { %3743 = vmatmul.msk.f32.gmra.mxu1 %vm219_vm0, %v639_v62 }
 0x1cf   : > { %v975_v56 = vpop.f32.mrf.mxu1 }
 0x1d0   : > { %1095 = vxpose.xlu2.b32.end [2/2] (short) (narrow) %v975_v56, 16 }
 0x1d2   : > { %3744 = vmatmul.msk.f32.gmra.mxu1 %vm219_vm0, %v640_v0 }
 0x1d7   : > { %v978_v57 = vpop.f32.mrf.mxu1 }
 0x1d8   : > { %1126 = vxpose.xlu0.b32.start [1/2] (short) (narrow) %v978_v57, 16 }
 0x1da   : > { %3745 = vmatmul.msk.f32.gmra.mxu1 %vm219_vm0, %v671_v2 }
 0x1df   : > { %v981_v58 = vpop.f32.mrf.mxu1 }
 0x1e0   : > { %1127 = vxpose.xlu0.b32.end [2/2] (short) (narrow) %v981_v58, 16 }
 0x1e2   : > { %3746 = vmatmul.msk.f32.gmra.mxu1 %vm219_vm0, %v672_v4 }
 0x1e7   : > { %v984_v59 = vpop.f32.mrf.mxu1 }
 0x1e8   : > { %1158 = vxpose.xlu1.b32.start [1/2] (short) (narrow) %v984_v59, 16 }
 0x1ea   : > { %3747 = vmatmul.msk.f32.gmra.mxu1 %vm219_vm0, %v703_v6 }
 0x1ef   : > { %v987_v60 = vpop.f32.mrf.mxu1 }
 0x1f0   : > { %1159 = vxpose.xlu1.b32.end [2/2] (short) (narrow) %v987_v60, 16 }
 0x1f2   : > { %3748 = vmatmul.msk.f32.gmra.mxu1 %vm219_vm0, %v704_v8 }
 0x1f7   : > { %v990_v61 = vpop.f32.mrf.mxu1 }
 0x1f8   : > { %1190 = vxpose.xlu2.b32.start [1/2] (short) (narrow) %v990_v61, 16 }
 0x1fa   : > { %3749 = vmatmul.msk.f32.gmra.mxu1 %vm219_vm0, %v735_v9 }
 0x1ff   : > { %v993_v63 = vpop.f32.mrf.mxu1 }
 0x200   : > { %1191 = vxpose.xlu2.b32.end [2/2] (short) (narrow) %v993_v63, 16 }
 0x202   : > { %3750 = vmatmul.msk.f32.gmra.mxu1 %vm219_vm0, %v736_v10 }
 0x207   : > { %v996_v1 = vpop.f32.mrf.mxu1 }
 0x208   : > { %1222 = vxpose.xlu0.b32.start [1/2] (short) (narrow) %v996_v1, 16 }
 0x20a   : > { %3751 = vmatmul.msk.f32.gmra.mxu1 %vm219_vm0, %v767_v11 }
 0x20f   : > { %v999_v3 = vpop.f32.mrf.mxu1 }
 0x210   : > { %1223 = vxpose.xlu0.b32.end [2/2] (short) (narrow) %v999_v3, 16 }
 0x212   : > { %3752 = vmatmul.msk.f32.gmra.mxu1 %vm219_vm0, %v768_v12 }
 0x217   : > { %v1002_v5 = vpop.f32.mrf.mxu1 }
 0x218   : > { %1254 = vxpose.xlu1.b32.start [1/2] (short) (narrow) %v1002_v5, 16 }
 0x21a   : > { %3753 = vmatmul.msk.f32.gmra.mxu1 %vm219_vm0, %v799_v13 }
 0x21f   : > { %v1005_v7 = vpop.f32.mrf.mxu1 }
 0x220   : > { %1255 = vxpose.xlu1.b32.end [2/2] (short) (narrow) %v1005_v7, 16 }
 0x222   : > { %3754 = vmatmul.msk.f32.gmra.mxu1 %vm219_vm0, %v800_v14 }
 0x227   : > { %v1008_v29 = vpop.f32.mrf.mxu1 }
 0x22a   : > { %3755 = vmatmul.msk.f32.gmra.mxu1 %vm219_vm0, %v831_v15 }
 0x232   : > { %3756 = vmatmul.msk.f32.gmra.mxu1 %vm219_vm0, %v832_v16 }
 0x25c   : > { %v1078_v17 = vpop.trf.xlu1 }
 0x25d   : > { %v1577_v21 = vrot.slane %v1078_v17, 4 }
 0x261   : > { %v1110_v24 = vpop.trf.xlu2 }
 0x262   : > { %v1589_v27 = vrot.slane %v1110_v24, 4 }
 0x264   : > { %v1079_v20 = vpop.trf.xlu1 }
 0x265   : > { %v1633_v46 = vrot.slane %v1079_v20, 4 }
 0x269   : > { %v1111_v44 = vpop.trf.xlu2 }
 0x26a   : > { %v1645_v52 = vrot.slane %v1111_v44, 4 }
 0x27c   : > { %v1142_v22 = vpop.trf.xlu0 }
 0x27d   : > { %v1578_v25 = vsel %vm1575_vm1, %v1142_v22, %v1577_v21  ;;  %v1574_v26 = vrot.slane %v1142_v22, 4 }
 0x27e   : > { %v1586_v30 = vperm.slane %v1578_v25, %v4176_v23 }
 0x27f   : > { %v1576_v32 = vsel %vm1575_vm1, %v1574_v26, %v1078_v17 }
 0x280   : > { %v1613_v36 = vrot.slane %v1586_v30, 4  ;;  %v1582_v39 = vperm.slane %v1576_v32, %v4176_v23 }
 0x282   : > { %v1601_v51 = vrot.slane %v1582_v39, 4 }
 0x284   : > { %v1143_v40 = vpop.trf.xlu0 }
 0x285   : > { %v1631_v49 = vrot.slane %v1143_v40, 4  ;;  %v1634_v57 = vsel %vm1575_vm1, %v1143_v40, %v1633_v46 }
 0x286   : > { %v1642_v4 = vperm.slane %v1634_v57, %v4176_v23 }
 0x287   : > { %v1632_v59 = vsel %vm1575_vm1, %v1631_v49, %v1079_v20 }
 0x288   : > { %v1638_v3 = vperm.slane %v1632_v59, %v4176_v23  ;;  %v1669_v10 = vrot.slane %v1642_v4, 4 }
 0x28a   : > { %v1657_v12 = vrot.slane %v1638_v3, 4 }
 0x28c   : > { %v1174_v31 = vpop.trf.xlu1 }
 0x28d   : > { %v1587_v33 = vrot.slane %v1174_v31, 4  ;;  %v1590_v34 = vsel %vm1575_vm1, %v1174_v31, %v1589_v27 }
 0x28e   : > { %v1598_v37 = vperm.slane %v1590_v34, %v4176_v23 }
 0x28f   : > { %v1588_v38 = vsel %vm1575_vm1, %v1587_v33, %v1110_v24 }
 0x290   : > { %v1594_v41 = vperm.slane %v1588_v38, %v4176_v23  ;;  %v1611_v42 = vrot.slane %v1598_v37, 4  ;;  %v1614_v43 = vsel %vm1575_vm1, %v1598_v37, %v1613_v36 }
 0x291   : > { %v1622_v45 = vperm.slane %v1614_v43, %v4182_v35  ;;  %v1206_v37 = vpop.trf.xlu2 }
 0x292   : > { %v1599_v47 = vrot.slane %v1594_v41, 4  ;;  %v1612_v48 = vsel %vm1575_vm1, %v1611_v42, %v1586_v30  ;;  %v1602_v58 = vsel %vm1575_vm1, %v1594_v41, %v1601_v51  ;;  %v1011_v30 = vpop.f32.mrf.mxu1  ;;  %v1689_v57 = vrot.slane %v1206_v37, 4 }
 0x293   : > { %2107 = vrot.lane.b32.xlu1 %v1622_v45, %s4014_s12  ;;  %v1618_v50 = vperm.slane %v1612_v48, %v4182_v35  ;;  %v1629_v1 = vrot.slane %v1622_v45, 4  ;;  %v1610_v2 = vperm.slane %v1602_v58, %v4182_v35 }
 0x294   : > { %v1175_v53 = vpop.trf.xlu1  ;;  %v1600_v54 = vsel %vm1575_vm1, %v1599_v47, %v1582_v39 }
 0x295   : > { %v1643_v55 = vrot.slane %v1175_v53, 4  ;;  %2075 = vrot.lane.b32.xlu0 %v1618_v50, %s4015_s13  ;;  %v1627_v56 = vrot.slane %v1618_v50, 4  ;;  %v4201_v62 = vperm.slane %v1600_v54, %v4182_v35  ;;  %v1646_v63 = vsel %vm1575_vm1, %v1175_v53, %v1645_v52 }
 0x296   : > { %v1654_v6 = vperm.slane %v1646_v63, %v4176_v23  ;;  %v1630_v8 = vsel %vm1575_vm1, 0.0, %v1629_v1  ;;  %v1625_v11 = vrot.slane %v1610_v2, 4 }
 0x297   : > { %v1644_v60 = vsel %vm1575_vm1, %v1643_v55, %v1111_v44  ;;  %v1628_v61 = vsel %vm1575_vm1, 0.0, %v1627_v56  ;;  %v1623_v7 = vrot.slane %v4201_v62, 4 }
 0x298   : > { %v1650_v0 = vperm.slane %v1644_v60, %v4176_v23  ;;  %2091 = vrot.lane.b32.xlu2 %v1628_v61, %s4016_s14  ;;  %v1667_v13 = vrot.slane %v1654_v6, 4  ;;  %v1670_v15 = vsel %vm1575_vm1, %v1654_v6, %v1669_v10  ;;  %v1626_v17 = vsel %vm1575_vm1, 0.0, %v1625_v11 }
 0x299   : > { %v1624_v14 = vsel %vm1575_vm1, 0.0, %v1623_v7  ;;  %v1678_v18 = vperm.slane %v1670_v15, %v4182_v35  ;;  %v4238_v39 = vpop.trf.xlu2 }
 0x29a   : > { %v1655_v5 = vrot.slane %v1650_v0, 4  ;;  %v1658_v16 = vsel %vm1575_vm1, %v1650_v0, %v1657_v12  ;;  %v1668_v19 = vsel %vm1575_vm1, %v1667_v13, %v1642_v4  ;;  %v1014_v31 = vpop.f32.mrf.mxu1  ;;  %v1745_v7 = vrot.slane %v4238_v39, 4 }
 0x29b   : > { %2043 = vrot.lane.b32.xlu1 %v1610_v2, %s4017_s20  ;;  %v1666_v20 = vperm.slane %v1658_v16, %v4182_v35  ;;  %v1674_v21 = vperm.slane %v1668_v19, %v4182_v35  ;;  %v1685_v24 = vrot.slane %v1678_v18, 4 }
 0x29c   : > { %v4214_v9 = vsel %vm1575_vm1, %v1655_v5, %v1638_v3 }
 0x29d   : > { %2123 = vrot.lane.b32.xlu0 %v1630_v8, %s4018_s22  ;;  %v1681_v22 = vrot.slane %v1666_v20, 4  ;;  %v1683_v26 = vrot.slane %v1674_v21, 4  ;;  %v1686_v27 = vsel %vm1575_vm1, 0.0, %v1685_v24  ;;  %v4254_v53 = vperm.slane %v4214_v9, %v4182_v35 }
 0x29f   : > { %v1682_v25 = vsel %vm1575_vm1, 0.0, %v1681_v22  ;;  %v1684_v28 = vsel %vm1575_vm1, 0.0, %v1683_v26  ;;  %v1679_v54 = vrot.slane %v4254_v53, 4 }
 0x2a0   : > { %2027 = vrot.lane.b32.xlu2 %v1624_v14, %s4019_s23 }
 0x2a1   : > { %v1680_v55 = vsel %vm1575_vm1, 0.0, %v1679_v54 }
 0x2a2   : > { %v1017_v32 = vpop.f32.mrf.mxu1 }
 0x2a3   : > { %2059 = vrot.lane.b32.xlu1 %v1626_v17, %s4020_s27 }
 0x2a5   : > { %2219 = vrot.lane.b32.xlu0 %v1678_v18, %s4014_s12 }
 0x2a8   : > { %2187 = vrot.lane.b32.xlu2 %v1674_v21, %s4015_s13 }
 0x2aa   : > { %v1020_v33 = vpop.f32.mrf.mxu1 }
 0x2ab   : > { %2155 = vrot.lane.b32.xlu1 %v1666_v20, %s4017_s20 }
 0x2ac   : > { %v1238_v40 = vpop.trf.xlu0 }
 0x2ad   : > { %2171 = vrot.lane.b32.xlu0 %v1682_v25, %s4020_s27  ;;  %v1701_v63 = vrot.slane %v1238_v40, 4 }
 0x2b0   : > { %2235 = vrot.lane.b32.xlu2 %v1686_v27, %s4018_s22 }
 0x2b2   : > { %v1023_v34 = vpop.f32.mrf.mxu1 }
 0x2b3   : > { %2203 = vrot.lane.b32.xlu1 %v1684_v28, %s4016_s14 }
 0x2b4   : > { %v4242_v43 = vpop.trf.xlu0 }
 0x2b5   : > { %v1757_v14 = vrot.slane %v4242_v43, 4 }
 0x2ba   : > { %v1026_v60 = vpop.f32.mrf.mxu1 }
 0x2bc   : > { %v1270_v36 = vpop.trf.xlu1 }
 0x2bd   : > { %v1687_v59 = vrot.slane %v1270_v36, 4  ;;  %v1690_v61 = vsel %vm1575_vm1, %v1270_v36, %v1689_v57 }
 0x2be   : > { %v1698_v0 = vperm.slane %v1690_v61, %v4176_v23 }
 0x2c0   : > { %v1725_v5 = vrot.slane %v1698_v0, 4 }
 0x2c2   : > { %v1029_v13 = vpop.f32.mrf.mxu1 }
 0x2c4   : > { %v4236_v38 = vpop.trf.xlu1 }
 0x2c5   : > { %v1746_v18 = vsel %vm1575_vm1, %v4236_v38, %v1745_v7 }
 0x2c6   : > { %v1754_v27 = vperm.slane %v1746_v18, %v4176_v23 }
 0x2c8   : > { %v1781_v36 = vrot.slane %v1754_v27, 4 }
 0x2cf   : > { %1318 = vxpose.xlu0.b32.start [1/2] (short) (narrow) %v1014_v31, 16 }
 0x2d6   : > { %1286 = vxpose.xlu2.b32.start [1/2] (short) (narrow) %v1008_v29, 16 }
 0x2d7   : > { %1319 = vxpose.xlu0.b32.end [2/2] (short) (narrow) %v1017_v32, 16 }
 0x2de   : > { %1287 = vxpose.xlu2.b32.end [2/2] (short) (narrow) %v1011_v30, 16 }
 0x2e8   : > { %1350 = vxpose.xlu1.b32.start [1/2] (short) (narrow) %v1020_v33, 16  ;;  %v1743_v33 = vrot.slane %v4236_v38, 4 }
 0x2ea   : > { %v1744_v38 = vsel %vm1575_vm1, %v1743_v33, %v4238_v39 }
 0x2f0   : > { %1351 = vxpose.xlu1.b32.end [2/2] (short) (narrow) %v1023_v34, 16 }
 0x2f2   : > { %v2092_v42 = vpop.permute.xlu2 %2091 }
 0x2fa   : > { %v2028_v45 = vpop.permute.xlu2 %2027 }
 0x2fb   : > { %v2248_v46 = vsel %vm2247_vm2, %v4201_v62, %v2028_v45  ;;  %v1688_v62 = vsel %vm1575_vm1, %v1687_v59, %v1206_v37 }
 0x2fc   : > { %v1694_v1 = vperm.slane %v1688_v62, %v4176_v23 }
 0x2fe   : > { %v1713_v9 = vrot.slane %v1694_v1, 4 }
 0x302   : > { %v4259_v56 = vpop.permute.xlu2 %2187 }
 0x305   : > { %v4240_v41 = vpop.permute.xlu1 %2107 }
 0x307   : > { %v2076_v49 = vpop.permute.xlu0 %2075 }
 0x30a   : > { %v4261_v58 = vpop.permute.xlu2 %2235 }
 0x30d   : > { %v2044_v44 = vpop.permute.xlu1 %2043 }
 0x30e   : > { %v2253_v47 = vsel %vm2252_vm3, %v2248_v46, %v2044_v44 }
 0x30f   : > { %v2124_v62 = vpop.permute.xlu0 %2123 }
 0x315   : > { %v2060_v48 = vpop.permute.xlu1 %2059 }
 0x316   : > { %v2258_v50 = vsel %vm2257_vm4, %v2253_v47, %v2060_v48  ;;  %v1750_v48 = vperm.slane %v1744_v38, %v4176_v23 }
 0x317   : > { %v2263_v51 = vsel %vm2262_vm5, %v2258_v50, %v2076_v49 }
 0x318   : > { %v4250_v52 = vsel %vm2267_vm6, %v2263_v51, %v2092_v42  ;;  %v1769_v54 = vrot.slane %v1750_v48, 4 }
 0x347   : > { %2139 = vrot.lane.b32.xlu2 %v1680_v55, %s4019_s23 }
 0x36d   : > { %1382 = vxpose.xlu2.b32.start [1/2] (short) (narrow) %v1026_v60, 16 }
 0x36f   : > { %v1302_v2 = vpop.trf.xlu2 }
 0x370   : > { %v1699_v3 = vrot.slane %v1302_v2, 4  ;;  %v1702_v4 = vsel %vm1575_vm1, %v1302_v2, %v1701_v63 }
 0x371   : > { %v1710_v6 = vperm.slane %v1702_v4, %v4176_v23 }
 0x372   : > { %v1700_v8 = vsel %vm1575_vm1, %v1699_v3, %v1238_v40 }
 0x373   : > { %v1706_v10 = vperm.slane %v1700_v8, %v4176_v23  ;;  %v1723_v11 = vrot.slane %v1710_v6, 4  ;;  %v1726_v12 = vsel %vm1575_vm1, %v1710_v6, %v1725_v5 }
 0x374   : > { %v4275_v15 = vperm.slane %v1726_v12, %v4182_v35 }
 0x375   : > { %1383 = vxpose.xlu2.b32.end [2/2] (short) (narrow) %v1029_v13, 16  ;;  %v1724_v16 = vsel %vm1575_vm1, %v1723_v11, %v1698_v0  ;;  %v1714_v17 = vsel %vm1575_vm1, %v1706_v10, %v1713_v9  ;;  %v1711_v19 = vrot.slane %v1706_v10, 4  ;;  %v2220_v0 = vpop.permute.xlu0 %2219 }
 0x376   : > { %2109 = vrot.lane.b32.xlu0 %v4275_v15, %s4014_s12  ;;  %v4284_v20 = vperm.slane %v1724_v16, %v4182_v35  ;;  %v4287_v21 = vperm.slane %v1714_v17, %v4182_v35 }
 0x377   : > { %v1303_v22 = vpop.trf.xlu2  ;;  %v1712_v31 = vsel %vm1575_vm1, %v1711_v19, %v1694_v1  ;;  %v2156_v1 = vpop.permute.xlu1 %2155 }
 0x378   : > { %v1755_v24 = vrot.slane %v1303_v22, 4  ;;  %v1758_v25 = vsel %vm1575_vm1, %v1303_v22, %v1757_v14  ;;  %v1739_v26 = vrot.slane %v4284_v20, 4  ;;  %v1737_v29 = vrot.slane %v4287_v21, 4 }
 0x379   : > { %v1766_v28 = vperm.slane %v1758_v25, %v4176_v23  ;;  %v4302_v40 = vperm.slane %v1712_v31, %v4182_v35 }
 0x37a   : > { %v1740_v30 = vsel %vm1575_vm1, 0.0, %v1739_v26  ;;  %v1756_v34 = vsel %vm1575_vm1, %v1755_v24, %v4242_v43  ;;  %v1738_v37 = vsel %vm1575_vm1, 0.0, %v1737_v29 }
 0x37b   : > { %v1779_v32 = vrot.slane %v1766_v28, 4  ;;  %2093 = vrot.lane.b32.xlu1 %v1740_v30, %s4016_s14  ;;  %v1762_v44 = vperm.slane %v1756_v34, %v4176_v23  ;;  %v1782_v45 = vsel %vm1575_vm1, %v1766_v28, %v1781_v36  ;;  %v1735_v43 = vrot.slane %v4302_v40, 4 }
 0x37c   : > { %v1790_v47 = vperm.slane %v1782_v45, %v4182_v35 }
 0x37d   : > { %v1780_v42 = vsel %vm1575_vm1, %v1779_v32, %v1754_v27  ;;  %v1767_v49 = vrot.slane %v1762_v44, 4  ;;  %v1736_v50 = vsel %vm1575_vm1, 0.0, %v1735_v43  ;;  %v1770_v39 = vsel %vm1575_vm1, %v1762_v44, %v1769_v54  ;;  %v2172_v4 = vpop.permute.xlu0 %2171 }
 0x37e   : > { %2061 = vrot.lane.b32.xlu0 %v1738_v37, %s4020_s27  ;;  %v1786_v46 = vperm.slane %v1780_v42, %v4182_v35  ;;  %v1797_v51 = vrot.slane %v1790_v47, 4  ;;  %v1778_v60 = vperm.slane %v1770_v39, %v4182_v35 }
 0x37f   : > { %v1768_v55 = vsel %vm1575_vm1, %v1767_v49, %v1750_v48  ;;  %v2204_v7 = vpop.permute.xlu1 %2203 }
 0x380   : > { %v1798_v57 = vsel %vm1575_vm1, 0.0, %v1797_v51  ;;  %v4321_v59 = vperm.slane %v1768_v55, %v4182_v35  ;;  %v1793_v18 = vrot.slane %v1778_v60, 4  ;;  %v1795_v22 = vrot.slane %v1786_v46, 4 }
 0x382   : > { %v1791_v61 = vrot.slane %v4321_v59, 4 }
 0x383   : > { %2189 = vrot.lane.b32.xlu1 %v1786_v46, %s4015_s13 }
 0x384   : > { %v1792_v63 = vsel %vm1575_vm1, 0.0, %v1791_v61 }
 0x386   : > { %2029 = vrot.lane.b32.xlu0 %v1736_v50, %s4019_s23 }
 0x38b   : > { %2237 = vrot.lane.b32.xlu1 %v1798_v57, %s4018_s22 }
 0x38c   : > { %v1366_v25 = vpop.trf.xlu1 }
 0x38e   : > { %2157 = vrot.lane.b32.xlu0 %v1778_v60, %s4017_s20 }
 0x393   : > { %2141 = vrot.lane.b32.xlu1 %v1792_v63, %s4019_s23 }
 0x394   : > { %v1367_v27 = vpop.trf.xlu1 }
 0x3a1   : > { %v2140_v2 = vpop.permute.xlu2 %2139 }
 0x3a2   : > { %v2282_v3 = vsel %vm2247_vm2, %v4254_v53, %v2140_v2  ;;  %v1032_v53 = vpop.f32.mrf.mxu1 }
 0x3a3   : > { %v2286_v5 = vsel %vm2252_vm3, %v2282_v3, %v2156_v1 }
 0x3a4   : > { %v2290_v6 = vsel %vm2257_vm4, %v2286_v5, %v2172_v4 }
 0x3a5   : > { %v2294_v8 = vsel %vm2262_vm5, %v2290_v6, %v4259_v56  ;;  %v2273_v56 = vsel %vm2272_vm7, %v4250_v52, %v4240_v41  ;;  %v1794_v41 = vsel %vm1575_vm1, 0.0, %v1793_v18  ;;  %v1334_v52 = vpop.trf.xlu0 }
 0x3a6   : > { %v2298_v9 = vsel %vm2267_vm6, %v2294_v8, %v2204_v7  ;;  %v2278_v16 = vsel %vm2277_vm8, %v2273_v56, %v2124_v62  ;;  %v1801_v57 = vrot.slane %v1334_v52, 4 }
 0x3a7   : > { %v2302_v10 = vsel %vm2272_vm7, %v2298_v9, %v2220_v0  ;;  %v1813_v0 = vrot.slane %v1366_v25, 4 }
 0x3a8   : > { %v4339_v11 = vsel %vm2277_vm8, %v2302_v10, %v4261_v58  ;;  %v1741_v58 = vrot.slane %v4275_v15, 4 }
 0x3aa   : > { %v1035_v12 = vpop.f32.mrf.mxu1  ;;  %v1742_v17 = vsel %vm1575_vm1, 0.0, %v1741_v58 }
 0x3b0   : > { %1414 = vxpose.xlu0.b32.start [1/2] (short) (narrow) %v1032_v53, 16 }
 0x3b2   : > { %v1038_v13 = vpop.f32.mrf.mxu1 }
 0x3b8   : > { %1415 = vxpose.xlu0.b32.end [2/2] (short) (narrow) %v1035_v12, 16 }
 0x3ba   : > { %v1041_v14 = vpop.f32.mrf.mxu1 }
 0x3c2   : > { %v1044_v19 = vpop.f32.mrf.mxu1 }
 0x3c8   : > { %1446 = vxpose.xlu1.b32.start [1/2] (short) (narrow) %v1038_v13, 16  ;;  %v1869_v13 = vrot.slane %v1367_v27, 4 }
 0x3ca   : > { %v1047_v15 = vpop.f32.mrf.mxu1 }
 0x3d0   : > { %1447 = vxpose.xlu1.b32.end [2/2] (short) (narrow) %v1041_v14, 16 }
 0x3d2   : > { %v1050_v29 = vpop.f32.mrf.mxu1 }
 0x3d8   : > { %2311 = vxpose.xlu1.b32.start.end [1/1] (short) %v2278_v16, 128 }
 0x3da   : > { %v1053_v32 = vpop.f32.mrf.mxu1 }
 0x3de   : > { %2045 = vrot.lane.b32.xlu2 %v4287_v21, %s4017_s20  ;;  %v4355_v21 = vpop.trf.xlu0 }
 0x3df   : > { %v1857_v16 = vrot.slane %v4355_v21, 4 }
 0x3e6   : > { %2077 = vrot.lane.b32.xlu2 %v4284_v20, %s4015_s13  ;;  %v1796_v20 = vsel %vm1575_vm1, 0.0, %v1795_v22 }
 0x3e8   : > { %v4359_v24 = vpop.permute.xlu0 %2109 }
 0x3ed   : > { %v4365_v30 = vpop.permute.xlu1 %2093 }
 0x3ee   : > { %2125 = vrot.lane.b32.xlu2 %v1742_v17, %s4018_s22 }
 0x3f0   : > { %v4361_v26 = vpop.permute.xlu0 %2061 }
 0x3f5   : > { %v4369_v33 = vpop.permute.xlu1 %2189 }
 0x3f6   : > { %2221 = vrot.lane.b32.xlu2 %v1790_v47, %s4014_s12 }
 0x3f8   : > { %v4363_v28 = vpop.permute.xlu0 %2029 }
 0x3fd   : > { %v4371_v37 = vpop.permute.xlu1 %2237 }
 0x3fe   : > { %2173 = vrot.lane.b32.xlu2 %v1794_v41, %s4020_s27 }
 0x400   : > { %v4367_v31 = vpop.permute.xlu0 %2157 }
 0x405   : > { %v4373_v38 = vpop.permute.xlu1 %2141 }
 0x406   : > { %v1398_v36 = vpop.trf.xlu2 }
 0x407   : > { %v1799_v60 = vrot.slane %v1398_v36, 4  ;;  %v1802_v61 = vsel %vm1575_vm1, %v1398_v36, %v1801_v57 }
 0x408   : > { %v1810_v1 = vperm.slane %v1802_v61, %v4176_v23 }
 0x409   : > { %v1800_v62 = vsel %vm1575_vm1, %v1799_v60, %v1334_v52 }
 0x40a   : > { %v1806_v3 = vperm.slane %v1800_v62, %v4176_v23  ;;  %v1837_v5 = vrot.slane %v1810_v1, 4 }
 0x40c   : > { %v1825_v7 = vrot.slane %v1806_v3, 4 }
 0x40e   : > { %v1399_v45 = vpop.trf.xlu2 }
 0x40f   : > { %v1855_v46 = vrot.slane %v1399_v45, 4  ;;  %v1858_v41 = vsel %vm1575_vm1, %v1399_v45, %v1857_v16 }
 0x411   : > { %v1856_v48 = vsel %vm1575_vm1, %v1855_v46, %v4355_v21 }
 0x412   : > { %v1862_v49 = vperm.slane %v1856_v48, %v4176_v23 }
 0x414   : > { %v1881_v22 = vrot.slane %v1862_v49, 4 }
 0x424   : > { %1478 = vxpose.xlu2.b32.start [1/2] (short) (narrow) %v1044_v19, 16 }
 0x426   : > { %2205 = vrot.lane.b32.xlu0 %v1796_v20, %s4016_s14  ;;  %v1866_v20 = vperm.slane %v1858_v41, %v4176_v23 }
 0x42c   : > { %1479 = vxpose.xlu2.b32.end [2/2] (short) (narrow) %v1047_v15, 16 }
 0x438   : > { %v2046_v61 = vpop.permute.xlu2 %2045 }
 0x448   : > { %1510 = vxpose.xlu0.b32.start [1/2] (short) (narrow) %v1050_v29, 16 }
 0x450   : > { %1511 = vxpose.xlu0.b32.end [2/2] (short) (narrow) %v1053_v32, 16 }
 0x454   : > { %v1430_v34 = vpop.trf.xlu0 }
 0x455   : > { %v1811_v2 = vrot.slane %v1430_v34, 4  ;;  %v1814_v4 = vsel %vm1575_vm1, %v1430_v34, %v1813_v0 }
 0x456   : > { %v1822_v8 = vperm.slane %v1814_v4, %v4176_v23  ;;  %v2078_v4 = vpop.permute.xlu2 %2077 }
 0x457   : > { %v1812_v6 = vsel %vm1575_vm1, %v1811_v2, %v1366_v25 }
 0x458   : > { %v1818_v9 = vperm.slane %v1812_v6, %v4176_v23  ;;  %v1838_v10 = vsel %vm1575_vm1, %v1822_v8, %v1837_v5  ;;  %v1835_v36 = vrot.slane %v1822_v8, 4  ;;  %v2249_v6 = vsel %vm2247_vm2, %v4302_v40, %v4363_v28 }
 0x459   : > { %v1846_v14 = vperm.slane %v1838_v10, %v4182_v35 }
 0x45a   : > { %v1826_v12 = vsel %vm1575_vm1, %v1818_v9, %v1825_v7  ;;  %v2254_v7 = vsel %vm2252_vm3, %v2249_v6, %v2046_v61 }
 0x45b   : > { %v1834_v56 = vperm.slane %v1826_v12, %v4182_v35 }
 0x45c   : > { %v1431_v42 = vpop.trf.xlu0 }
 0x45d   : > { %v1867_v44 = vrot.slane %v1431_v42, 4  ;;  %v1870_v58 = vsel %vm1575_vm1, %v1431_v42, %v1869_v13  ;;  %v1849_v17 = vrot.slane %v1834_v56, 4 }
 0x45e   : > { %v1878_v18 = vperm.slane %v1870_v58, %v4176_v23 }
 0x45f   : > { %v1868_v43 = vsel %vm1575_vm1, %v1867_v44, %v1367_v27  ;;  %v1850_v19 = vsel %vm1575_vm1, 0.0, %v1849_v17  ;;  %v1836_v44 = vsel %vm1575_vm1, %v1835_v36, %v1810_v1  ;;  %v1893_v1 = vrot.slane %v1866_v20, 4  ;;  %v1056_v17 = vpop.f32.mrf.mxu1 }
 0x460   : > { %v1874_v47 = vperm.slane %v1868_v43, %v4176_v23  ;;  %v1891_v15 = vrot.slane %v1878_v18, 4  ;;  %v1842_v46 = vperm.slane %v1836_v44, %v4182_v35  ;;  %v1823_v43 = vrot.slane %v1818_v9, 4 }
 0x461   : > { %v1894_v5 = vsel %vm1575_vm1, %v1878_v18, %v1893_v1  ;;  %v2259_v9 = vsel %vm2257_vm4, %v2254_v7, %v4361_v26 }
 0x462   : > { %v1879_v50 = vrot.slane %v1874_v47, 4  ;;  %v1882_v25 = vsel %vm1575_vm1, %v1874_v47, %v1881_v22  ;;  %v1892_v21 = vsel %vm1575_vm1, %v1891_v15, %v1866_v20  ;;  %v1853_v47 = vrot.slane %v1846_v14, 4 }
 0x463   : > { %v4418_v27 = vperm.slane %v1882_v25, %v4182_v35  ;;  %v4421_v29 = vperm.slane %v1892_v21, %v4182_v35  ;;  %v1824_v48 = vsel %vm1575_vm1, %v1823_v43, %v1806_v3  ;;  %v1851_v57 = vrot.slane %v1842_v46, 4 }
 0x464   : > { %v4383_v54 = vsel %vm1575_vm1, %v1879_v50, %v1862_v49  ;;  %v1854_v50 = vsel %vm1575_vm1, 0.0, %v1853_v47  ;;  %v1830_v60 = vperm.slane %v1824_v48, %v4182_v35  ;;  %v4452_v8 = vperm.slane %v1894_v5, %v4182_v35 }
 0x465   : > { %v1907_v34 = vrot.slane %v4421_v29, 4  ;;  %v1852_v62 = vsel %vm1575_vm1, 0.0, %v1851_v57  ;;  %v2264_v10 = vsel %vm2262_vm5, %v2259_v9, %v2078_v4 }
 0x466   : > { %v1847_v0 = vrot.slane %v1830_v60, 4  ;;  %v2269_v13 = vsel %vm2267_vm6, %v2264_v10, %v4365_v30  ;;  %v2310_v30 = vld [vmem:[%s4990_s0] sm:$0xff] }
 0x467   : > { %v1908_v42 = vsel %vm1575_vm1, 0.0, %v1907_v34  ;;  %v2274_v40 = vsel %vm2272_vm7, %v2269_v13, %v4359_v24  ;;  %3757 = vmatpush.xpose.msk.msrb.mxu0 %vm2567_vm9, %v2310_v30  ;;  %3896 = vmatpush.xpose.msk.msra.mxu2 %vm2567_vm9, %v2310_v30  ;;  %v1059_v24 = vpop.f32.mrf.mxu1 }
 0x468   : > { %v1848_v2 = vsel %vm1575_vm1, 0.0, %v1847_v0  ;;  %3897 = vmatpush.xpose.msk.msra.mxu3 %vm2567_vm9, %v2310_v30 }
 0x46c   : > { %v4380_v51 = vpop.trf.xlu1 }
 0x46d   : > { %v1913_v5 = vrot.slane %v4380_v51, 4 }
 0x474   : > { %v4385_v55 = vpop.trf.xlu1 }
 0x47c   : > { %v4387_v39 = vpop.trf.xlu1 }
 0x47d   : > { %3758 = vmatmul.msk.f32.vlgmr.msrb.gmra.mxu0 %vm2567_vm9, %v4387_v39 }
 0x484   : > { %v4391_v63 = vpop.trf.xlu1 }
 0x485   : > { %3759 = vmatmul.msk.f32.gmra.mxu0 %vm2567_vm9, %v4391_v63 }
 0x48c   : > { %v4400_v53 = vpop.trf.xlu1 }
 0x48d   : > { %3760 = vmatmul.msk.f32.gmra.mxu0 %vm2567_vm9, %v4400_v53 }
 0x494   : > { %v4410_v52 = vpop.trf.xlu1 }
 0x495   : > { %2111 = vrot.lane.b32.xlu2 %v1846_v14, %s4014_s12  ;;  %v2126_v14 = vpop.permute.xlu2 %2125  ;;  %3761 = vmatmul.msk.f32.gmra.mxu0 %vm2567_vm9, %v4410_v52 }
 0x496   : > { %v2279_v28 = vsel %vm2277_vm8, %v2274_v40, %v2126_v14 }
 0x498   : > { %v4483_v25 = vpop.permute.xlu0 %2205 }
 0x49c   : > { %v4423_v32 = vpop.trf.xlu1 }
 0x49d   : > { %2063 = vrot.lane.b32.xlu2 %v1850_v19, %s4020_s27  ;;  %v4470_v41 = vpop.permute.xlu2 %2221  ;;  %3762 = vmatmul.msk.f32.gmra.mxu0 %vm2567_vm9, %v4423_v32 }
 0x4a4   : > { %v4432_v45 = vpop.trf.xlu1 }
 0x4a5   : > { %2159 = vrot.lane.b32.xlu2 %v4418_v27, %s4017_s20  ;;  %v4475_v19 = vpop.permute.xlu2 %2173  ;;  %3763 = vmatmul.msk.f32.gmra.mxu0 %vm2567_vm9, %v4432_v45 }
 0x4aa   : > { %2047 = vrot.lane.b32.xlu1 %v1834_v56, %s4017_s20 }
 0x4ac   : > { %v4437_v49 = vpop.trf.xlu1 }
 0x4ad   : > { %2207 = vrot.lane.b32.xlu2 %v1908_v42, %s4016_s14  ;;  %3764 = vmatmul.msk.f32.gmra.mxu0 %vm2567_vm9, %v4437_v49 }
 0x4b2   : > { %2079 = vrot.lane.b32.xlu1 %v1842_v46, %s4015_s13 }
 0x4b4   : > { %v2334_v3 = vpop.trf.xlu1 }
 0x4b5   : > { %3765 = vmatmul.msk.f32.gmra.mxu0 %vm2567_vm9, %v2334_v3 }
 0x4ba   : > { %2127 = vrot.lane.b32.xlu1 %v1854_v50, %s4018_s22 }
 0x4bc   : > { %v2335_v12 = vpop.trf.xlu1 }
 0x4bd   : > { %v4479_v20 = vpop.trf.xlu2  ;;  %3766 = vmatmul.msk.f32.gmra.mxu0 %vm2567_vm9, %v2335_v12 }
 0x4be   : > { %2095 = vrot.lane.b32.xlu0 %v1852_v62, %s4016_s14  ;;  %v1925_v13 = vrot.slane %v4479_v20, 4 }
 0x4c2   : > { %2031 = vrot.lane.b32.xlu1 %v1848_v2, %s4019_s23 }
 0x4c4   : > { %v2336_v56 = vpop.trf.xlu1 }
 0x4c5   : > { %v4487_v21 = vpop.trf.xlu2  ;;  %3767 = vmatmul.msk.f32.gmra.mxu0 %vm2567_vm9, %v2336_v56 }
 0x4ca   : > { %2223 = vrot.lane.b32.xlu1 %v4452_v8, %s4014_s12 }
 0x4cc   : > { %v2337_v26 = vpop.trf.xlu1 }
 0x4cd   : > { %3768 = vmatmul.msk.f32.gmra.mxu0 %vm2567_vm9, %v2337_v26 }
 0x4d3   : > { %2375 = vxpose.xlu2.b32.start.end [1/1] (short) %v2279_v28, 128 }
 0x4d4   : > { %v2338_v16 = vpop.trf.xlu1 }
 0x4d5   : > { %3769 = vmatmul.msk.f32.gmra.mxu0 %vm2567_vm9, %v2338_v16 }
 0x4dc   : > { %v2339_v58 = vpop.trf.xlu1 }
 0x4dd   : > { %3770 = vmatmul.msk.f32.gmra.mxu0 %vm2567_vm9, %v2339_v58 }
 0x4e0   : > { %2343 = vxpose.xlu0.b32.start.end [1/1] (short) %v4339_v11, 128 }
 0x4e4   : > { %v2340_v18 = vpop.trf.xlu1 }
 0x4e5   : > { %3771 = vmatmul.msk.f32.gmra.mxu0 %vm2567_vm9, %v2340_v18 }
 0x4ec   : > { %v2341_v11 = vpop.trf.xlu1  ;;  %v1526_v34 = vpop.trf.xlu0 }
 0x4ed   : > { %3772 = vmatmul.msk.f32.gmra.mxu0 %vm2567_vm9, %v2341_v11  ;;  %v1911_v7 = vrot.slane %v1526_v34, 4  ;;  %v1914_v10 = vsel %vm1575_vm1, %v1526_v34, %v1913_v5 }
 0x4ee   : > { %v1922_v40 = vperm.slane %v1914_v10, %v4176_v23 }
 0x4ef   : > { %v2112_v63 = vpop.permute.xlu2 %2111  ;;  %v1912_v14 = vsel %vm1575_vm1, %v1911_v7, %v4380_v51 }
 0x4f0   : > { %v1918_v28 = vperm.slane %v1912_v14, %v4176_v23  ;;  %v1949_v58 = vrot.slane %v1922_v40, 4 }
 0x4f4   : > { %v2342_v22 = vpop.trf.xlu1  ;;  %v4491_v42 = vpop.trf.xlu0 }
 0x4f5   : > { %3773 = vmatmul.msk.f32.gmra.mxu0 %vm2567_vm9, %v2342_v22 }
 0x4f7   : > { %v2064_v46 = vpop.permute.xlu2 %2063 }
 0x4ff   : > { %1542 = vxpose.xlu1.b32.start [1/2] (short) (narrow) %v1056_v17, 16  ;;  %v4510_v57 = vpop.permute.xlu2 %2159 }
 0x507   : > { %1543 = vxpose.xlu1.b32.end [2/2] (short) (narrow) %v1059_v24, 16  ;;  %v4516_v61 = vpop.permute.xlu2 %2207  ;;  %v1937_v24 = vrot.slane %v1918_v28, 4 }
 0x51c   : > { %v2048_v15 = vpop.permute.xlu1 %2047 }
 0x524   : > { %v2080_v39 = vpop.permute.xlu1 %2079 }
 0x52c   : > { %v2128_v36 = vpop.permute.xlu1 %2127 }
 0x530   : > { %v2096_v47 = vpop.permute.xlu0 %2095 }
 0x534   : > { %v2032_v53 = vpop.permute.xlu1 %2031 }
 0x535   : > { %v2250_v44 = vsel %vm2247_vm2, %v1830_v60, %v2032_v53  ;;  %v1905_v60 = vrot.slane %v4418_v27, 4 }
 0x536   : > { %v2255_v52 = vsel %vm2252_vm3, %v2250_v44, %v2048_v15  ;;  %v1981_v15 = vrot.slane %v4487_v21, 4 }
 0x537   : > { %v2260_v43 = vsel %vm2257_vm4, %v2255_v52, %v2064_v46  ;;  %v1906_v49 = vsel %vm1575_vm1, 0.0, %v1905_v60 }
 0x538   : > { %v2265_v48 = vsel %vm2262_vm5, %v2260_v43, %v2080_v39  ;;  %v1967_v39 = vrot.slane %v4491_v42, 4  ;;  %v1969_v43 = vrot.slane %v4385_v55, 4 }
 0x539   : > { %v2270_v32 = vsel %vm2267_vm6, %v2265_v48, %v2096_v47 }
 0x53a   : > { %v2275_v50 = vsel %vm2272_vm7, %v2270_v32, %v2112_v63  ;;  %v1968_v53 = vsel %vm1575_vm1, %v1967_v39, %v4385_v55  ;;  %v1970_v5 = vsel %vm1575_vm1, %v4491_v42, %v1969_v43 }
 0x53b   : > { %v4504_v45 = vsel %vm2277_vm8, %v2275_v50, %v2128_v36  ;;  %v1974_v60 = vperm.slane %v1968_v53, %v4176_v23 }
 0x53c   : > { %v4536_v6 = vpop.permute.xlu1 %2223 }
 0x561   : > { %2175 = vrot.lane.b32.xlu1 %v1906_v49, %s4020_s27 }
 0x56c   : > { %v4519_v62 = vpop.trf.xlu2 }
 0x574   : > { %v4522_v0 = vpop.trf.xlu2 }
 0x57c   : > { %v4525_v1 = vpop.trf.xlu2 }
 0x584   : > { %v4528_v27 = vpop.trf.xlu2  ;;  %v2359_v3 = vpop.trf.xlu0 }
 0x585   : > { %3774 = vmatmul.msk.f32.gmra.mxu0 %vm2567_vm9, %v2359_v3 }
 0x58c   : > { %v4530_v2 = vpop.trf.xlu2  ;;  %v2360_v9 = vpop.trf.xlu0 }
 0x58d   : > { %3775 = vmatmul.msk.f32.gmra.mxu0 %vm2567_vm9, %v2360_v9  ;;  %v1993_v9 = vrot.slane %v1974_v60, 4 }
 0x594   : > { %v4533_v4 = vpop.trf.xlu2  ;;  %v2361_v30 = vpop.trf.xlu0 }
 0x595   : > { %3776 = vmatmul.msk.f32.gmra.mxu0 %vm2567_vm9, %v2361_v30 }
 0x59c   : > { %v4540_v12 = vpop.trf.xlu2  ;;  %v2362_v50 = vpop.trf.xlu0 }
 0x59d   : > { %3777 = vmatmul.msk.f32.gmra.mxu0 %vm2567_vm9, %v2362_v50 }
 0x5a3   : > { %v1558_v56 = vpop.trf.xlu1 }
 0x5a4   : > { %v1923_v26 = vrot.slane %v1558_v56, 4  ;;  %v1926_v16 = vsel %vm1575_vm1, %v1558_v56, %v1925_v13  ;;  %v4553_v22 = vpop.trf.xlu2  ;;  %v1978_v13 = vperm.slane %v1970_v5, %v4176_v23  ;;  %v2363_v56 = vpop.trf.xlu0 }
 0x5a5   : > { %v1934_v17 = vperm.slane %v1926_v16, %v4176_v23  ;;  %3778 = vmatmul.msk.f32.gmra.mxu0 %vm2567_vm9, %v2363_v56 }
 0x5a6   : > { %v1924_v18 = vsel %vm1575_vm1, %v1923_v26, %v4479_v20 }
 0x5a7   : > { %v1930_v11 = vperm.slane %v1924_v18, %v4176_v23  ;;  %v1950_v51 = vsel %vm1575_vm1, %v1934_v17, %v1949_v58  ;;  %v1947_v44 = vrot.slane %v1934_v17, 4  ;;  %v4596_v18 = vpop.f32.mrf.mxu0 }
 0x5a8   : > { %v4559_v34 = vperm.slane %v1950_v51, %v4182_v35 }
 0x5a9   : > { %v1938_v63 = vsel %vm1575_vm1, %v1930_v11, %v1937_v24  ;;  %v1948_v3 = vsel %vm1575_vm1, %v1947_v44, %v1922_v40  ;;  %v1935_v14 = vrot.slane %v1930_v11, 4 }
 0x5aa   : > { %2113 = vrot.lane.b32.xlu1 %v4559_v34, %s4014_s12  ;;  %v1946_v20 = vperm.slane %v1938_v63, %v4182_v35  ;;  %v4582_v10 = vperm.slane %v1948_v3, %v4182_v35 }
 0x5ab   : > { %v1559_v36 = vpop.trf.xlu1  ;;  %v1936_v17 = vsel %vm1575_vm1, %v1935_v14, %v1918_v28 }
 0x5ac   : > { %v1979_v46 = vrot.slane %v1559_v36, 4  ;;  %v1982_v52 = vsel %vm1575_vm1, %v1559_v36, %v1981_v15  ;;  %v1961_v47 = vrot.slane %v1946_v20, 4  ;;  %v2399_v49 = vpop.trf.xlu2  ;;  %v1963_v26 = vrot.slane %v4582_v10, 4  ;;  %v2364_v51 = vpop.trf.xlu0 }
 0x5ad   : > { %v1990_v32 = vperm.slane %v1982_v52, %v4176_v23  ;;  %3798 = vmatmul.msk.f32.vlgmr.msra.gmra.mxu2 %vm2567_vm9, %v2399_v49  ;;  %v4602_v24 = vperm.slane %v1936_v17, %v4182_v35  ;;  %3779 = vmatmul.msk.f32.gmra.mxu0 %vm2567_vm9, %v2364_v51  ;;  %v2005_v36 = vrot.slane %v1978_v13, 4  ;;  %v1909_v52 = vrot.slane %v4452_v8, 4 }
 0x5ae   : > { %v1980_v48 = vsel %vm1575_vm1, %v1979_v46, %v4487_v21  ;;  %v1962_v7 = vsel %vm1575_vm1, 0.0, %v1961_v47  ;;  %v1964_v30 = vsel %vm1575_vm1, 0.0, %v1963_v26 }
 0x5af   : > { %v1986_v55 = vperm.slane %v1980_v48, %v4176_v23  ;;  %v2003_v21 = vrot.slane %v1990_v32, 4  ;;  %v1959_v28 = vrot.slane %v4602_v24, 4  ;;  %v2006_v46 = vsel %vm1575_vm1, %v1990_v32, %v2005_v36 }
 0x5b0   : > { %v2014_v43 = vperm.slane %v2006_v46, %v4182_v35  ;;  %v1910_v48 = vsel %vm1575_vm1, 0.0, %v1909_v52 }
 0x5b1   : > { %v1994_v40 = vsel %vm1575_vm1, %v1986_v55, %v1993_v9  ;;  %v2004_v42 = vsel %vm1575_vm1, %v2003_v21, %v1978_v13  ;;  %v1960_v63 = vsel %vm1575_vm1, 0.0, %v1959_v28  ;;  %v1991_v47 = vrot.slane %v1986_v55, 4 }
 0x5b2   : > { %2065 = vrot.lane.b32.xlu1 %v1962_v7, %s4020_s27  ;;  %v4591_v58 = vperm.slane %v1994_v40, %v4182_v35  ;;  %v2010_v23 = vperm.slane %v2004_v42, %v4182_v35  ;;  %v2021_v49 = vrot.slane %v2014_v43, 4  ;;  %v1965_v42 = vrot.slane %v4559_v34, 4 }
 0x5b3   : > { %v1992_v8 = vsel %vm1575_vm1, %v1991_v47, %v1974_v60  ;;  %v2283_v28 = vsel %vm2247_vm2, %v4321_v59, %v4373_v38 }
 0x5b4   : > { %2049 = vrot.lane.b32.xlu2 %v1946_v20, %s4017_s20  ;;  %v2400_v16 = vpop.trf.xlu2  ;;  %v2019_v11 = vrot.slane %v2010_v23, 4  ;;  %v4611_v20 = vpop.f32.mrf.mxu0  ;;  %v2022_v55 = vsel %vm1575_vm1, 0.0, %v2021_v49  ;;  %v1966_v26 = vsel %vm1575_vm1, 0.0, %v1965_v42 }
 0x5b5   : > { %3799 = vmatmul.msk.f32.gmra.mxu2 %vm2567_vm9, %v2400_v16  ;;  %v2365_v53 = vpop.trf.xlu0 }
 0x5b6   : > { %v2020_v39 = vsel %vm1575_vm1, 0.0, %v2019_v11  ;;  %3780 = vmatmul.msk.f32.gmra.mxu0 %vm2567_vm9, %v2365_v53 }
 0x5ba   : > { %2161 = vrot.lane.b32.xlu1 %v4591_v58, %s4017_s20 }
 0x5bc   : > { %2097 = vrot.lane.b32.xlu2 %v1964_v30, %s4016_s14  ;;  %v2401_v15 = vpop.trf.xlu2  ;;  %v4627_v50 = vpop.f32.mrf.mxu0 }
 0x5bd   : > { %3800 = vmatmul.msk.f32.gmra.mxu2 %vm2567_vm9, %v2401_v15  ;;  %v2366_v32 = vpop.trf.xlu0  ;;  %v2287_v15 = vsel %vm2252_vm3, %v2283_v28, %v4367_v31 }
 0x5be   : > { %3781 = vmatmul.msk.f32.gmra.mxu0 %vm2567_vm9, %v2366_v32 }
 0x5c2   : > { %2209 = vrot.lane.b32.xlu1 %v2020_v39, %s4016_s14  ;;  %v2291_v39 = vsel %vm2257_vm4, %v2287_v15, %v4475_v19 }
 0x5c3   : > { %v2295_v36 = vsel %vm2262_vm5, %v2291_v39, %v4369_v33 }
 0x5c4   : > { %2033 = vrot.lane.b32.xlu2 %v1960_v63, %s4019_s23  ;;  %v2402_v44 = vpop.trf.xlu2  ;;  %v4643_v60 = vpop.f32.mrf.mxu0  ;;  %v2299_v53 = vsel %vm2267_vm6, %v2295_v36, %v4483_v25 }
 0x5c5   : > { %3801 = vmatmul.msk.f32.gmra.mxu2 %vm2567_vm9, %v2402_v44  ;;  %v2367_v21 = vpop.trf.xlu0  ;;  %v2303_v59 = vsel %vm2272_vm7, %v2299_v53, %v4470_v41 }
 0x5c6   : > { %2191 = vrot.lane.b32.xlu0 %v4421_v29, %s4015_s13  ;;  %v4625_v29 = vperm.slane %v4383_v54, %v4182_v35  ;;  %v4636_v54 = vperm.slane %v1992_v8, %v4182_v35  ;;  %3782 = vmatmul.msk.f32.gmra.mxu0 %vm2567_vm9, %v2367_v21  ;;  %v2307_v31 = vsel %vm2277_vm8, %v2303_v59, %v4371_v37 }
 0x5c8   : > { %v1903_v5 = vrot.slane %v4625_v29, 4  ;;  %v2015_v9 = vrot.slane %v4636_v54, 4 }
 0x5ca   : > { %v1904_v7 = vsel %vm1575_vm1, 0.0, %v1903_v5  ;;  %v2016_v14 = vsel %vm1575_vm1, 0.0, %v2015_v9 }
 0x5cc   : > { %2193 = vrot.lane.b32.xlu2 %v2010_v23, %s4015_s13  ;;  %v2403_v3 = vpop.trf.xlu2  ;;  %v4653_v56 = vpop.f32.mrf.mxu0 }
 0x5cd   : > { %3802 = vmatmul.msk.f32.gmra.mxu2 %vm2567_vm9, %v2403_v3  ;;  %v2368_v35 = vpop.trf.xlu0 }
 0x5ce   : > { %2239 = vrot.lane.b32.xlu0 %v1910_v48, %s4018_s22  ;;  %3783 = vmatmul.msk.f32.gmra.mxu0 %vm2567_vm9, %v2368_v35 }
 0x5d4   : > { %2241 = vrot.lane.b32.xlu2 %v2022_v55, %s4018_s22  ;;  %v2404_v13 = vpop.trf.xlu2 }
 0x5d5   : > { %3803 = vmatmul.msk.f32.gmra.mxu2 %vm2567_vm9, %v2404_v13  ;;  %v2369_v16 = vpop.trf.xlu0 }
 0x5d6   : > { %2143 = vrot.lane.b32.xlu0 %v1904_v7, %s4019_s23  ;;  %3784 = vmatmul.msk.f32.gmra.mxu0 %vm2567_vm9, %v2369_v16 }
 0x5dc   : > { %2145 = vrot.lane.b32.xlu2 %v2016_v14, %s4019_s23  ;;  %v2405_v40 = vpop.trf.xlu2 }
 0x5dd   : > { %3804 = vmatmul.msk.f32.gmra.mxu2 %vm2567_vm9, %v2405_v40  ;;  %v2370_v23 = vpop.trf.xlu0 }
 0x5de   : > { %2081 = vrot.lane.b32.xlu0 %v4582_v10, %s4015_s13  ;;  %v4659_v10 = vpop.f32.mrf.mxu0  ;;  %3785 = vmatmul.msk.f32.gmra.mxu0 %vm2567_vm9, %v2370_v23  ;;  %s3621_s13 = scalar_lea.sflag [#allocation3], %s191_s30 }
 0x5e4   : > { %v2406_v17 = vpop.trf.xlu2 }
 0x5e5   : > { %3805 = vmatmul.msk.f32.gmra.mxu2 %vm2567_vm9, %v2406_v17  ;;  %v2371_v30 = vpop.trf.xlu0 }
 0x5e6   : > { %2129 = vrot.lane.b32.xlu0 %v1966_v26, %s4018_s22  ;;  %v4663_v34 = vpop.f32.mrf.mxu0  ;;  %3786 = vmatmul.msk.f32.gmra.mxu0 %vm2567_vm9, %v2371_v30 }
 0x5ed   : > { %v2372_v11 = vpop.trf.xlu0 }
 0x5ee   : > { %2225 = vrot.lane.b32.xlu0 %v2014_v43, %s4014_s12  ;;  %v4666_v51 = vpop.f32.mrf.mxu0  ;;  %3787 = vmatmul.msk.f32.gmra.mxu0 %vm2567_vm9, %v2372_v11  ;;  %s3636_s12 = sshll.u32 %s3633_s10, 4  ;;  %s3637_s12 = int_to_ptr.hbm [resolvable:$true] %s3636_s12 }
 0x5ef   : > { %s3962_s14 = sshra.s32 %s3637_s12, 4  ;;  %s3963_s14 = int_to_ptr.hbm [resolvable:$true] %s3962_s14 }
 0x5f0   : > { %s3964_s20 = scalar_lea.hbm %s3963_s14, 64  ;;  %p3969_p0 = scmp.lt.s32.totalorder %s3963_s14, %s4994_s4 }
 0x5f1   : > { %p3965_p11 = scmp.ne.s32.totalorder %s3963_s14, %s3964_s20 }
 0x5f3   : > { %p3966_p12 = pnand %p3965_p11, %p4085_p5 }
 0x5f5   : > { %v2373_v63 = vpop.trf.xlu0  ;;  %p3967_p13 = pneg %p3966_p12 }
 0x5f6   : > { %3788 = vmatmul.msk.f32.gmra.mxu0 %vm2567_vm9, %v2373_v63  ;;  %v4682_v44 = vpop.f32.mrf.mxu0 }
 0x5fd   : > { %v2374_v38 = vpop.trf.xlu0 }
 0x5fe   : > { %3789 = vmatmul.msk.f32.gmra.mxu0 %vm2567_vm9, %v2374_v38  ;;  %v4689_v19 = vpop.f32.mrf.mxu0 }
 0x602   : > { %2439 = vxpose.xlu2.b32.start.end [1/1] (short) %v4504_v45, 128 }
 0x606   : > { %3790 = vmatmul.msk.f32.gmra.mxu0 %vm2567_vm9, %v4519_v62  ;;  %v4693_v33 = vpop.f32.mrf.mxu0  ;;  %v2176_v62 = vpop.permute.xlu1 %2175 }
 0x60e   : > { %3791 = vmatmul.msk.f32.gmra.mxu0 %vm2567_vm9, %v4522_v0  ;;  %v4697_v25 = vpop.f32.mrf.mxu0  ;;  %v2050_v41 = vpop.permute.xlu2 %2049 }
 0x610   : > { %2407 = vxpose.xlu0.b32.start.end [1/1] (short) %v2307_v31, 128 }
 0x616   : > { %3792 = vmatmul.msk.f32.gmra.mxu0 %vm2567_vm9, %v4525_v1  ;;  %v4703_v37 = vpop.f32.mrf.mxu0  ;;  %v2098_v52 = vpop.permute.xlu2 %2097 }
 0x61c   : > { %v2114_v43 = vpop.permute.xlu1 %2113 }
 0x61e   : > { %3793 = vmatmul.msk.f32.gmra.mxu0 %vm2567_vm9, %v4528_v27  ;;  %v4707_v46 = vpop.f32.mrf.mxu0  ;;  %v2034_v48 = vpop.permute.xlu2 %2033 }
 0x624   : > { %v2066_v8 = vpop.permute.xlu1 %2065 }
 0x626   : > { %3794 = vmatmul.msk.f32.gmra.mxu0 %vm2567_vm9, %v4530_v2  ;;  %v4711_v1 = vpop.f32.mrf.mxu0  ;;  %v4761_v11 = vpop.permute.xlu2 %2193 }
 0x62c   : > { %v4771_v15 = vpop.permute.xlu1 %2161 }
 0x62e   : > { %3795 = vmatmul.msk.f32.gmra.mxu0 %vm2567_vm9, %v4533_v4  ;;  %v2251_v4 = vsel %vm2247_vm2, %v4602_v24, %v2034_v48  ;;  %v4728_v5 = vpop.f32.mrf.mxu0 }
 0x630   : > { %v4751_v17 = vpop.f32.mrf.mxu2 }
 0x634   : > { %v4779_v36 = vpop.permute.xlu1 %2209 }
 0x636   : > { %3796 = vmatmul.msk.f32.gmra.mxu0 %vm2567_vm9, %v4540_v12 }
 0x638   : > { %v2192_v45 = vpop.permute.xlu0 %2191 }
 0x63e   : > { %3797 = vmatmul.msk.f32.gmra.mxu0 %vm2567_vm9, %v4553_v22 }
 0x640   : > { %v2240_v0 = vpop.permute.xlu0 %2239 }
 0x648   : > { %v2144_v47 = vpop.permute.xlu0 %2143 }
 0x649   : > { %v2284_v27 = vsel %vm2247_vm2, %v4625_v29, %v2144_v47 }
 0x64a   : > { %v2288_v2 = vsel %vm2252_vm3, %v2284_v27, %v4510_v57  ;;  %v2256_v57 = vsel %vm2252_vm3, %v2251_v4, %v2050_v41 }
 0x64b   : > { %v2292_v32 = vsel %vm2257_vm4, %v2288_v2, %v2176_v62  ;;  %v2261_v24 = vsel %vm2257_vm4, %v2256_v57, %v2066_v8  ;;  %v4810_v2 = vpop.f32.mrf.mxu0 }
 0x64c   : > { %v2296_v49 = vsel %vm2262_vm5, %v2292_v32, %v2192_v45 }
 0x64d   : > { %v2300_v3 = vsel %vm2267_vm6, %v2296_v49, %v4516_v61 }
 0x64e   : > { %v2304_v12 = vsel %vm2272_vm7, %v2300_v3, %v4536_v6 }
 0x64f   : > { %v2308_v29 = vsel %vm2277_vm8, %v2304_v12, %v2240_v0 }
 0x650   : > { %v2082_v55 = vpop.permute.xlu0 %2081  ;;  %2471 = vxpose.xlu1.b32.start.end [1/1] (short) %v2308_v29, 128 }
 0x651   : > { %v2266_v7 = vsel %vm2262_vm5, %v2261_v24, %v2082_v55 }
 0x652   : > { %v2271_v61 = vsel %vm2267_vm6, %v2266_v7, %v2098_v52 }
 0x653   : > { %v2276_v6 = vsel %vm2272_vm7, %v2271_v61, %v2114_v43  ;;  %v4816_v4 = vpop.f32.mrf.mxu0 }
 0x658   : > { %v2130_v21 = vpop.permute.xlu0 %2129 }
 0x659   : > { %v2281_v9 = vsel %vm2277_vm8, %v2276_v6, %v2130_v21 }
 0x65b   : > { %v4820_v29 = vpop.f32.mrf.mxu0 }
 0x660   : > { %v4738_v13 = vpop.permute.xlu0 %2225 }
 0x663   : > { %v4825_v24 = vpop.f32.mrf.mxu0 }
 0x6b4   : > { %v2423_v14 = vpop.trf.xlu0 }
 0x6b5   : > { %3806 = vmatmul.msk.f32.gmra.mxu2 %vm2567_vm9, %v2423_v14 }
 0x6bc   : > { %v2424_v35 = vpop.trf.xlu0 }
 0x6bd   : > { %3807 = vmatmul.msk.f32.gmra.mxu2 %vm2567_vm9, %v2424_v35 }
 0x6c4   : > { %v2425_v22 = vpop.trf.xlu0 }
 0x6c5   : > { %3808 = vmatmul.msk.f32.gmra.mxu2 %vm2567_vm9, %v2425_v22 }
 0x6cc   : > { %v2426_v40 = vpop.trf.xlu0 }
 0x6cd   : > { %3809 = vmatmul.msk.f32.gmra.mxu2 %vm2567_vm9, %v2426_v40 }
 0x6d0   : > { %3356 = vxpose.xlu1.b32.start [1/16] (narrow) %v4596_v18, 8  ;;  %v2017_v18 = vrot.slane %v4591_v58, 4  ;;  %v4768_v58 = vpop.permute.xlu2 %2241 }
 0x6d4   : > { %v2427_v42 = vpop.trf.xlu0 }
 0x6d5   : > { %3810 = vmatmul.msk.f32.gmra.mxu2 %vm2567_vm9, %v2427_v42 }
 0x6d8   : > { %3357 = vxpose.xlu1.b32.cont [2/16] (narrow) %v4611_v20, 8  ;;  %v4756_v20 = vpop.f32.mrf.mxu2  ;;  %v4776_v63 = vpop.permute.xlu2 %2145 }
 0x6d9   : > { %v2285_v6 = vsel %vm2247_vm2, %v4636_v54, %v4776_v63 }
 0x6da   : > { %v2289_v35 = vsel %vm2252_vm3, %v2285_v6, %v4771_v15 }
 0x6dc   : > { %v2428_v26 = vpop.trf.xlu0 }
 0x6dd   : > { %3811 = vmatmul.msk.f32.gmra.mxu2 %vm2567_vm9, %v2428_v26 }
 0x6e0   : > { %3358 = vxpose.xlu1.b32.cont [3/16] (narrow) %v4627_v50, 8  ;;  %v2018_v50 = vsel %vm1575_vm1, 0.0, %v2017_v18  ;;  %v4764_v28 = vpop.f32.mrf.mxu2  ;;  %v2455_v59 = vpop.trf.xlu2 }
 0x6e4   : > { %v2429_v16 = vpop.trf.xlu0 }
 0x6e5   : > { %3812 = vmatmul.msk.f32.gmra.mxu2 %vm2567_vm9, %v2429_v16 }
 0x6e8   : > { %3359 = vxpose.xlu1.b32.cont [4/16] (narrow) %v4643_v60, 8  ;;  %v4773_v39 = vpop.f32.mrf.mxu2  ;;  %v2456_v41 = vpop.trf.xlu2 }
 0x6ec   : > { %v2430_v23 = vpop.trf.xlu0 }
 0x6ed   : > { %3813 = vmatmul.msk.f32.gmra.mxu2 %vm2567_vm9, %v2430_v23 }
 0x6f0   : > { %3360 = vxpose.xlu1.b32.cont [5/16] (narrow) %v4653_v56, 8 }
 0x6f4   : > { %v2431_v30 = vpop.trf.xlu0  ;;  %v4786_v31 = vpop.trf.xlu1 }
 0x6f5   : > { %3814 = vmatmul.msk.f32.gmra.mxu2 %vm2567_vm9, %v2431_v30 }
 0x6f6   : > { %2177 = vrot.lane.b32.xlu0 %v2018_v50, %s4020_s27  ;;  %s3968_s27 = scalar_lea.hbm %s4994_s4, 128 }
 0x6f7   : > { %p3970_p1 = scmp.lt.s32.totalorder %s3968_s27, %s3964_s20 }
 0x6f8   : > { %3361 = vxpose.xlu1.b32.cont [6/16] (narrow) %v4659_v10, 8 }
 0x6f9   : > { %p3971_p2 = por %p3970_p1, %p3969_p0 }
 0x6fb   : > { %p3972_p3 = pnand %p3971_p2, %p3967_p13 }
 0x6fc   : > { %v2432_v60 = vpop.trf.xlu0 }
 0x6fd   : > { %3815 = vmatmul.msk.f32.gmra.mxu2 %vm2567_vm9, %v2432_v60 }
 0x700   : > { %3362 = vxpose.xlu1.b32.cont [7/16] (narrow) %v4663_v34, 8  ;;  %v4782_v34 = vpop.f32.mrf.mxu2 }
 0x704   : > { %v2433_v56 = vpop.trf.xlu0 }
 0x705   : > { %3816 = vmatmul.msk.f32.gmra.mxu2 %vm2567_vm9, %v2433_v56 }
 0x708   : > { %3363 = vxpose.xlu1.b32.cont [8/16] (narrow) %v4666_v51, 8  ;;  %v4788_v51 = vpop.f32.mrf.mxu2 }
 0x70c   : > { %v2434_v10 = vpop.trf.xlu0 }
 0x70d   : > { %3817 = vmatmul.msk.f32.gmra.mxu2 %vm2567_vm9, %v2434_v10 }
 0x710   : > { %3364 = vxpose.xlu1.b32.cont [9/16] (narrow) %v4682_v44, 8  ;;  %v4792_v44 = vpop.trf.xlu1  ;;  %v4794_v62 = vpop.f32.mrf.mxu2 }
 0x714   : > { %v2435_v53 = vpop.trf.xlu0 }
 0x715   : > { %3818 = vmatmul.msk.f32.gmra.mxu2 %vm2567_vm9, %v2435_v53 }
 0x718   : > { %3365 = vxpose.xlu1.b32.cont [10/16] (narrow) %v4689_v19, 8  ;;  %2503 = vxpose.xlu0.b32.start.end [1/1] (short) %v2281_v9, 128  ;;  %v2457_v19 = vpop.trf.xlu2  ;;  %v4798_v52 = vpop.trf.xlu1 }
 0x719   : > { %v4801_v43 = vpop.f32.mrf.mxu2  ;;  %v4833_v9 = vpop.f32.mrf.mxu0 }
 0x71c   : > { %v2436_v38 = vpop.trf.xlu0 }
 0x71d   : > { %3819 = vmatmul.msk.f32.gmra.mxu2 %vm2567_vm9, %v2436_v38 }
 0x720   : > { %3366 = vxpose.xlu1.b32.cont [11/16] (narrow) %v4693_v33, 8  ;;  %v4804_v33 = vpop.trf.xlu1  ;;  %v2458_v47 = vpop.trf.xlu2 }
 0x721   : > { %v3035_v50 = vpop.f32.mrf.mxu0 }
 0x724   : > { %v2437_v45 = vpop.trf.xlu0 }
 0x725   : > { %3820 = vmatmul.msk.f32.gmra.mxu2 %vm2567_vm9, %v2437_v45 }
 0x728   : > { %3367 = vxpose.xlu1.b32.cont [12/16] (narrow) %v4697_v25, 8  ;;  %v2491_v48 = vpop.trf.xlu1  ;;  %v2459_v25 = vpop.trf.xlu2 }
 0x729   : > { %3842 = vmatmul.msk.f32.vlgmr.msra.gmra.mxu3 %vm2567_vm9, %v2491_v48 }
 0x72c   : > { %v2438_v0 = vpop.trf.xlu0 }
 0x72d   : > { %3821 = vmatmul.msk.f32.gmra.mxu2 %vm2567_vm9, %v2438_v0 }
 0x730   : > { %3368 = vxpose.xlu1.b32.cont [13/16] (narrow) %v4703_v37, 8  ;;  %v2492_v37 = vpop.trf.xlu1  ;;  %v2460_v49 = vpop.trf.xlu2 }
 0x731   : > { %3843 = vmatmul.msk.f32.gmra.mxu3 %vm2567_vm9, %v2492_v37 }
 0x735   : > { %3822 = vmatmul.msk.f32.gmra.mxu2 %vm2567_vm9, %v2455_v59 }
 0x738   : > { %3369 = vxpose.xlu1.b32.cont [14/16] (narrow) %v4707_v46, 8  ;;  %v3116_v27 = vpop.f32.mrf.mxu2  ;;  %v2493_v3 = vpop.trf.xlu1 }
 0x739   : > { %3844 = vmatmul.msk.f32.gmra.mxu3 %vm2567_vm9, %v2493_v3  ;;  %v2461_v12 = vpop.trf.xlu2 }
 0x73d   : > { %3823 = vmatmul.msk.f32.gmra.mxu2 %vm2567_vm9, %v2456_v41 }
 0x740   : > { %3370 = vxpose.xlu1.b32.cont [15/16] (narrow) %v4711_v1, 8  ;;  %v3119_v32 = vpop.f32.mrf.mxu2  ;;  %v2494_v1 = vpop.trf.xlu1 }
 0x741   : > { %3845 = vmatmul.msk.f32.gmra.mxu3 %vm2567_vm9, %v2494_v1 }
 0x745   : > { %3824 = vmatmul.msk.f32.gmra.mxu2 %vm2567_vm9, %v2457_v19 }
 0x748   : > { %3371 = vxpose.xlu1.b32.end [16/16] (narrow) %v4728_v5, 8  ;;  %v3122_v46 = vpop.f32.mrf.mxu2  ;;  %v2462_v5 = vpop.trf.xlu2 }
 0x749   : > { %v2495_v55 = vpop.trf.xlu1 }
 0x74a   : > { %3846 = vmatmul.msk.f32.gmra.mxu3 %vm2567_vm9, %v2495_v55 }
 0x74d   : > { %3825 = vmatmul.msk.f32.gmra.mxu2 %vm2567_vm9, %v2458_v47 }
 0x750   : > { %v3125_v8 = vpop.f32.mrf.mxu2  ;;  %3452 = vxpose.xlu1.b32.start [1/16] (narrow) %v3116_v27, 8  ;;  %v2463_v21 = vpop.trf.xlu2 }
 0x751   : > { %v2496_v61 = vpop.trf.xlu1 }
 0x752   : > { %3847 = vmatmul.msk.f32.gmra.mxu3 %vm2567_vm9, %v2496_v61 }
 0x755   : > { %3826 = vmatmul.msk.f32.gmra.mxu2 %vm2567_vm9, %v2459_v25 }
 0x758   : > { %v3128_v57 = vpop.f32.mrf.mxu2  ;;  %3453 = vxpose.xlu1.b32.cont [2/16] (narrow) %v3119_v32, 8  ;;  %v2464_v18 = vpop.trf.xlu2 }
 0x759   : > { %v2497_v26 = vpop.trf.xlu1 }
 0x75a   : > { %3848 = vmatmul.msk.f32.gmra.mxu3 %vm2567_vm9, %v2497_v26 }
 0x75d   : > { %3827 = vmatmul.msk.f32.gmra.mxu2 %vm2567_vm9, %v2460_v49 }
 0x760   : > { %v3131_v7 = vpop.f32.mrf.mxu2  ;;  %3454 = vxpose.xlu1.b32.cont [3/16] (narrow) %v3122_v46, 8  ;;  %v2465_v56 = vpop.trf.xlu2 }
 0x765   : > { %3828 = vmatmul.msk.f32.gmra.mxu2 %vm2567_vm9, %v2461_v12 }
 0x768   : > { %v2178_v14 = vpop.permute.xlu0 %2177  ;;  %v3134_v22 = vpop.f32.mrf.mxu2  ;;  %3455 = vxpose.xlu1.b32.cont [4/16] (narrow) %v3125_v8, 8 }
 0x769   : > { %v2293_v40 = vsel %vm2257_vm4, %v2289_v35, %v2178_v14  ;;  %v2466_v63 = vpop.trf.xlu2 }
 0x76a   : > { %v2297_v42 = vsel %vm2262_vm5, %v2293_v40, %v4761_v11  ;;  %v2498_v11 = vpop.trf.xlu1 }
 0x76b   : > { %v2301_v16 = vsel %vm2267_vm6, %v2297_v42, %v4779_v36  ;;  %3849 = vmatmul.msk.f32.gmra.mxu3 %vm2567_vm9, %v2498_v11 }
 0x76c   : > { %v2305_v54 = vsel %vm2272_vm7, %v2301_v16, %v4738_v13  ;;  %v3038_v13 = vpop.f32.mrf.mxu0 }
 0x76d   : > { %3829 = vmatmul.msk.f32.gmra.mxu2 %vm2567_vm9, %v2462_v5  ;;  %v2309_v23 = vsel %vm2277_vm8, %v2305_v54, %v4768_v58 }
 0x76e   : > { %2535 = vxpose.xlu2.b32.start.end [1/1] (short) %v2309_v23, 128 }
 0x770   : > { %v3137_v30 = vpop.f32.mrf.mxu2  ;;  %3456 = vxpose.xlu1.b32.cont [5/16] (narrow) %v3128_v57, 8 }
 0x771   : > { %v2467_v38 = vpop.trf.xlu2 }
 0x772   : > { %v2499_v15 = vpop.trf.xlu1 }
 0x773   : > { %3850 = vmatmul.msk.f32.gmra.mxu3 %vm2567_vm9, %v2499_v15 }
 0x774   : > { %v3041_v36 = vpop.f32.mrf.mxu0 }
 0x775   : > { %3830 = vmatmul.msk.f32.gmra.mxu2 %vm2567_vm9, %v2463_v21 }
 0x778   : > { %v3140_v60 = vpop.f32.mrf.mxu2  ;;  %3457 = vxpose.xlu1.b32.cont [6/16] (narrow) %v3131_v7, 8 }
 0x779   : > { %v2468_v0 = vpop.trf.xlu2 }
 0x77a   : > { %v2500_v10 = vpop.trf.xlu1 }
 0x77b   : > { %3851 = vmatmul.msk.f32.gmra.mxu3 %vm2567_vm9, %v2500_v10 }
 0x77c   : > { %v3044_v41 = vpop.f32.mrf.mxu0 }
 0x77d   : > { %3831 = vmatmul.msk.f32.gmra.mxu2 %vm2567_vm9, %v2464_v18 }
 0x780   : > { %3458 = vxpose.xlu1.b32.cont [7/16] (narrow) %v3134_v22, 8  ;;  %v3143_v58 = vpop.f32.mrf.mxu2 }
 0x781   : > { %v2469_v48 = vpop.trf.xlu2 }
 0x782   : > { %v2501_v53 = vpop.trf.xlu1 }
 0x783   : > { %3852 = vmatmul.msk.f32.gmra.mxu3 %vm2567_vm9, %v2501_v53 }
 0x784   : > { %v3047_v47 = vpop.f32.mrf.mxu0 }
 0x785   : > { %3832 = vmatmul.msk.f32.gmra.mxu2 %vm2567_vm9, %v2465_v56 }
 0x788   : > { %3459 = vxpose.xlu1.b32.cont [8/16] (narrow) %v3137_v30, 8  ;;  %v3146_v59 = vpop.f32.mrf.mxu2 }
 0x789   : > { %v2470_v37 = vpop.trf.xlu2 }
 0x78a   : > { %v2502_v45 = vpop.trf.xlu1 }
 0x78b   : > { %3853 = vmatmul.msk.f32.gmra.mxu3 %vm2567_vm9, %v2502_v45 }
 0x78c   : > { %v3050_v25 = vpop.f32.mrf.mxu0 }
 0x78d   : > { %3833 = vmatmul.msk.f32.gmra.mxu2 %vm2567_vm9, %v2466_v63 }
 0x790   : > { %3460 = vxpose.xlu1.b32.cont [9/16] (narrow) %v3140_v60, 8  ;;  %v3149_v19 = vpop.f32.mrf.mxu2 }
 0x794   : > { %v3053_v49 = vpop.f32.mrf.mxu0 }
 0x795   : > { %3834 = vmatmul.msk.f32.gmra.mxu2 %vm2567_vm9, %v2467_v38 }
 0x798   : > { %3388 = vxpose.xlu0.b32.start [1/16] (narrow) %v4810_v2, 8  ;;  %3461 = vxpose.xlu1.b32.cont [10/16] (narrow) %v3143_v58, 8  ;;  %v3152_v27 = vpop.f32.mrf.mxu2 }
 0x79c   : > { %v3056_v46 = vpop.f32.mrf.mxu0 }
 0x79d   : > { %3835 = vmatmul.msk.f32.gmra.mxu2 %vm2567_vm9, %v2468_v0 }
 0x7a0   : > { %3389 = vxpose.xlu0.b32.cont [2/16] (narrow) %v4816_v4, 8  ;;  %3462 = vxpose.xlu1.b32.cont [11/16] (narrow) %v3146_v59, 8  ;;  %v3155_v32 = vpop.f32.mrf.mxu2 }
 0x7a4   : > { %v3059_v8 = vpop.f32.mrf.mxu0 }
 0x7a5   : > { %3836 = vmatmul.msk.f32.gmra.mxu2 %vm2567_vm9, %v2469_v48 }
 0x7a8   : > { %3390 = vxpose.xlu0.b32.cont [3/16] (narrow) %v4820_v29, 8  ;;  %3463 = vxpose.xlu1.b32.cont [12/16] (narrow) %v3149_v19, 8  ;;  %v3158_v2 = vpop.f32.mrf.mxu2 }
 0x7ac   : > { %v4876_v1 = vpop.f32.mrf.mxu3  ;;  %v3062_v29 = vpop.f32.mrf.mxu0 }
 0x7ad   : > { %3837 = vmatmul.msk.f32.gmra.mxu2 %vm2567_vm9, %v2470_v37 }
 0x7b0   : > { %3391 = vxpose.xlu0.b32.cont [4/16] (narrow) %v4825_v24, 8  ;;  %3464 = vxpose.xlu1.b32.cont [13/16] (narrow) %v3152_v27, 8  ;;  %v3161_v3 = vpop.f32.mrf.mxu2 }
 0x7b4   : > { %v4881_v5 = vpop.f32.mrf.mxu3  ;;  %v3065_v55 = vpop.f32.mrf.mxu0 }
 0x7b5   : > { %3838 = vmatmul.msk.f32.gmra.mxu2 %vm2567_vm9, %v4786_v31 }
 0x7b8   : > { %3392 = vxpose.xlu0.b32.cont [5/16] (narrow) %v4833_v9, 8  ;;  %3465 = vxpose.xlu1.b32.cont [14/16] (narrow) %v3155_v32, 8  ;;  %v4874_v31 = vpop.f32.mrf.mxu2 }
 0x7bc   : > { %v2519_v4 = vpop.trf.xlu0  ;;  %v4884_v61 = vpop.f32.mrf.mxu3 }
 0x7bd   : > { %3839 = vmatmul.msk.f32.gmra.mxu2 %vm2567_vm9, %v4792_v44  ;;  %3854 = vmatmul.msk.f32.gmra.mxu3 %vm2567_vm9, %v2519_v4  ;;  %v3068_v21 = vpop.f32.mrf.mxu0 }
 0x7c0   : > { %3393 = vxpose.xlu0.b32.cont [6/16] (narrow) %v3035_v50, 8  ;;  %3466 = vxpose.xlu1.b32.cont [15/16] (narrow) %v3158_v2, 8  ;;  %v3167_v44 = vpop.f32.mrf.mxu2 }
 0x7c4   : > { %v2520_v12 = vpop.trf.xlu0  ;;  %v4888_v9 = vpop.f32.mrf.mxu3 }
 0x7c5   : > { %3840 = vmatmul.msk.f32.gmra.mxu2 %vm2567_vm9, %v4798_v52  ;;  %3855 = vmatmul.msk.f32.gmra.mxu3 %vm2567_vm9, %v2520_v12  ;;  %v3071_v14 = vpop.f32.mrf.mxu0 }
 0x7c8   : > { %3394 = vxpose.xlu0.b32.cont [7/16] (narrow) %v3038_v13, 8  ;;  %3467 = vxpose.xlu1.b32.end [16/16] (narrow) %v3161_v3, 8  ;;  %v3170_v24 = vpop.f32.mrf.mxu2 }
 0x7cc   : > { %v2521_v57 = vpop.trf.xlu0 }
 0x7cd   : > { %3841 = vmatmul.msk.f32.gmra.mxu2 %vm2567_vm9, %v4804_v33  ;;  %3856 = vmatmul.msk.f32.gmra.mxu3 %vm2567_vm9, %v2521_v57  ;;  %v4891_v40 = vpop.f32.mrf.mxu3  ;;  %v3074_v42 = vpop.f32.mrf.mxu0 }
 0x7d0   : > { %3395 = vxpose.xlu0.b32.cont [8/16] (narrow) %v3041_v36, 8  ;;  %v3173_v6 = vpop.f32.mrf.mxu2 }
 0x7d4   : > { %v2522_v52 = vpop.trf.xlu0 }
 0x7d5   : > { %3857 = vmatmul.msk.f32.gmra.mxu3 %vm2567_vm9, %v2522_v52  ;;  %v4894_v54 = vpop.f32.mrf.mxu3  ;;  %v3077_v18 = vpop.f32.mrf.mxu0 }
 0x7d8   : > { %3396 = vxpose.xlu0.b32.cont [9/16] (narrow) %v3044_v41, 8  ;;  %v3176_v22 = vpop.f32.mrf.mxu2 }
 0x7dc   : > { %v2523_v7 = vpop.trf.xlu0 }
 0x7dd   : > { %3858 = vmatmul.msk.f32.gmra.mxu3 %vm2567_vm9, %v2523_v7  ;;  %v4897_v11 = vpop.f32.mrf.mxu3  ;;  %v3080_v60 = vpop.f32.mrf.mxu0 }
 0x7e0   : > { %3397 = vxpose.xlu0.b32.cont [10/16] (narrow) %v3047_v47, 8  ;;  %v3179_v16 = vpop.f32.mrf.mxu2 }
 0x7e4   : > { %v2524_v33 = vpop.trf.xlu0 }
 0x7e5   : > { %3859 = vmatmul.msk.f32.gmra.mxu3 %vm2567_vm9, %v2524_v33  ;;  %v3083_v58 = vpop.f32.mrf.mxu0 }
 0x7e8   : > { %3398 = vxpose.xlu0.b32.cont [11/16] (narrow) %v3050_v25, 8  ;;  %v3182_v30 = vpop.f32.mrf.mxu2 }
 0x7ec   : > { %v2525_v35 = vpop.trf.xlu0 }
 0x7ed   : > { %3860 = vmatmul.msk.f32.gmra.mxu3 %vm2567_vm9, %v2525_v35  ;;  %v3086_v53 = vpop.f32.mrf.mxu0 }
 0x7ee   : > { %3420 = vxpose.xlu2.b32.start [1/16] (narrow) %v3068_v21, 8  ;;  %v4901_v13 = vpop.f32.mrf.mxu3 }
 0x7f0   : > { %3399 = vxpose.xlu0.b32.cont [12/16] (narrow) %v3053_v49, 8  ;;  %v3185_v15 = vpop.f32.mrf.mxu2 }
 0x7f4   : > { %v2526_v26 = vpop.trf.xlu0 }
 0x7f5   : > { %3861 = vmatmul.msk.f32.gmra.mxu3 %vm2567_vm9, %v2526_v26  ;;  %v3089_v0 = vpop.f32.mrf.mxu0 }
 0x7f6   : > { %3421 = vxpose.xlu2.b32.cont [2/16] (narrow) %v3071_v14, 8  ;;  %v4904_v36 = vpop.f32.mrf.mxu3 }
 0x7f8   : > { %3400 = vxpose.xlu0.b32.cont [13/16] (narrow) %v3056_v46, 8  ;;  %v3188_v10 = vpop.f32.mrf.mxu2 }
 0x7fc   : > { %v2527_v23 = vpop.trf.xlu0 }
 0x7fd   : > { %3862 = vmatmul.msk.f32.gmra.mxu3 %vm2567_vm9, %v2527_v23 }
 0x7fe   : > { %3422 = vxpose.xlu2.b32.cont [3/16] (narrow) %v3074_v42, 8  ;;  %v4908_v45 = vpop.f32.mrf.mxu3 }
 0x800   : > { %3401 = vxpose.xlu0.b32.cont [14/16] (narrow) %v3059_v8, 8  ;;  %v3191_v41 = vpop.f32.mrf.mxu2 }
 0x804   : > { %v2528_v50 = vpop.trf.xlu0 }
 0x805   : > { %3863 = vmatmul.msk.f32.gmra.mxu3 %vm2567_vm9, %v2528_v50 }
 0x806   : > { %3423 = vxpose.xlu2.b32.cont [4/16] (narrow) %v3077_v18, 8  ;;  %v4911_v25 = vpop.f32.mrf.mxu3 }
 0x807   : > { %v2551_v38 = vpop.trf.xlu2 }
 0x808   : > { %3402 = vxpose.xlu0.b32.cont [15/16] (narrow) %v3062_v29, 8  ;;  %v3194_v27 = vpop.f32.mrf.mxu2 }
 0x80c   : > { %v2529_v56 = vpop.trf.xlu0 }
 0x80d   : > { %3864 = vmatmul.msk.f32.gmra.mxu3 %vm2567_vm9, %v2529_v56 }
 0x80e   : > { %3424 = vxpose.xlu2.b32.cont [5/16] (narrow) %v3080_v60, 8  ;;  %v4917_v2 = vpop.f32.mrf.mxu3 }
 0x80f   : > { %v2552_v47 = vpop.trf.xlu2 }
 0x810   : > { %3403 = vxpose.xlu0.b32.end [16/16] (narrow) %v3065_v55, 8  ;;  %v3197_v49 = vpop.f32.mrf.mxu2 }
 0x814   : > { %v2530_v63 = vpop.trf.xlu0 }
 0x815   : > { %3865 = vmatmul.msk.f32.gmra.mxu3 %vm2567_vm9, %v2530_v63 }
 0x816   : > { %3425 = vxpose.xlu2.b32.cont [6/16] (narrow) %v3083_v58, 8 }
 0x817   : > { %v2553_v32 = vpop.trf.xlu2 }
 0x818   : > { %3484 = vxpose.xlu0.b32.start [1/16] (narrow) %v4874_v31, 8  ;;  %v3200_v4 = vpop.f32.mrf.mxu2 }
 0x81c   : > { %v2531_v59 = vpop.trf.xlu0 }
 0x81d   : > { %3866 = vmatmul.msk.f32.gmra.mxu3 %vm2567_vm9, %v2531_v59 }
 0x81e   : > { %3426 = vxpose.xlu2.b32.cont [7/16] (narrow) %v3086_v53, 8  ;;  %v3372_v53 = vpop.trf.xlu1 }
 0x81f   : > { %v2554_v46 = vpop.trf.xlu2  ;;  %3612 = vst [vmem:[%s193_s6] sm:$0xff] %v3372_v53 }
 0x820   : > { %3485 = vxpose.xlu0.b32.cont [2/16] (narrow) %v3167_v44, 8 }
 0x824   : > { %v2532_v19 = vpop.trf.xlu0 }
 0x825   : > { %3867 = vmatmul.msk.f32.gmra.mxu3 %vm2567_vm9, %v2532_v19 }
 0x826   : > { %3427 = vxpose.xlu2.b32.cont [8/16] (narrow) %v3089_v0, 8 }
 0x828   : > { %3486 = vxpose.xlu0.b32.cont [3/16] (narrow) %v3170_v24, 8 }
 0x82c   : > { %v2533_v48 = vpop.trf.xlu0 }
 0x82d   : > { %3868 = vmatmul.msk.f32.gmra.mxu3 %vm2567_vm9, %v2533_v48 }
 0x82e   : > { %3428 = vxpose.xlu2.b32.cont [9/16] (narrow) %v4751_v17, 8  ;;  %v2555_v17 = vpop.trf.xlu2 }
 0x830   : > { %3487 = vxpose.xlu0.b32.cont [4/16] (narrow) %v3173_v6, 8 }
 0x834   : > { %v2534_v37 = vpop.trf.xlu0 }
 0x835   : > { %3869 = vmatmul.msk.f32.gmra.mxu3 %vm2567_vm9, %v2534_v37 }
 0x836   : > { %3429 = vxpose.xlu2.b32.cont [10/16] (narrow) %v4756_v20, 8  ;;  %v3203_v20 = vpop.f32.mrf.mxu2  ;;  %v2556_v12 = vpop.trf.xlu2 }
 0x838   : > { %3488 = vxpose.xlu0.b32.cont [5/16] (narrow) %v3176_v22, 8 }
 0x83c   : > { %v3404_v59 = vpop.trf.xlu0 }
 0x83d   : > { %3870 = vmatmul.msk.f32.gmra.mxu3 %vm2567_vm9, %v2551_v38  ;;  %3613 = vst [vmem:[%s193_s6 + $0x8] sm:$0xff] %v3404_v59 }
 0x83e   : > { %3430 = vxpose.xlu2.b32.cont [11/16] (narrow) %v4764_v28, 8  ;;  %v3206_v28 = vpop.f32.mrf.mxu2  ;;  %v2557_v57 = vpop.trf.xlu2 }
 0x840   : > { %v3260_v3 = vpop.f32.mrf.mxu3  ;;  %3489 = vxpose.xlu0.b32.cont [6/16] (narrow) %v3179_v16, 8 }
 0x841   : > { %3548 = vxpose.xlu1.b32.start [1/16] (narrow) %v3260_v3, 8 }
 0x845   : > { %3871 = vmatmul.msk.f32.gmra.mxu3 %vm2567_vm9, %v2552_v47 }
 0x846   : > { %3431 = vxpose.xlu2.b32.cont [12/16] (narrow) %v4773_v39, 8  ;;  %v3209_v39 = vpop.f32.mrf.mxu2 }
 0x848   : > { %v3263_v8 = vpop.f32.mrf.mxu3  ;;  %3490 = vxpose.xlu0.b32.cont [7/16] (narrow) %v3182_v30, 8 }
 0x849   : > { %3549 = vxpose.xlu1.b32.cont [2/16] (narrow) %v3263_v8, 8 }
 0x84d   : > { %3872 = vmatmul.msk.f32.gmra.mxu3 %vm2567_vm9, %v2553_v32 }
 0x84e   : > { %3432 = vxpose.xlu2.b32.cont [13/16] (narrow) %v4782_v34, 8  ;;  %v2558_v34 = vpop.trf.xlu2  ;;  %v3212_v52 = vpop.f32.mrf.mxu2 }
 0x850   : > { %v3266_v31 = vpop.f32.mrf.mxu3  ;;  %3491 = vxpose.xlu0.b32.cont [8/16] (narrow) %v3185_v15, 8 }
 0x851   : > { %3550 = vxpose.xlu1.b32.cont [3/16] (narrow) %v3266_v31, 8 }
 0x855   : > { %3873 = vmatmul.msk.f32.gmra.mxu3 %vm2567_vm9, %v2554_v46 }
 0x856   : > { %3433 = vxpose.xlu2.b32.cont [14/16] (narrow) %v4788_v51, 8  ;;  %v2559_v51 = vpop.trf.xlu2  ;;  %v3215_v7 = vpop.f32.mrf.mxu2 }
 0x858   : > { %v3269_v29 = vpop.f32.mrf.mxu3  ;;  %3492 = vxpose.xlu0.b32.cont [9/16] (narrow) %v3188_v10, 8 }
 0x859   : > { %3551 = vxpose.xlu1.b32.cont [4/16] (narrow) %v3269_v29, 8 }
 0x85d   : > { %3874 = vmatmul.msk.f32.gmra.mxu3 %vm2567_vm9, %v2555_v17 }
 0x85e   : > { %3434 = vxpose.xlu2.b32.cont [15/16] (narrow) %v4794_v62, 8  ;;  %v2560_v62 = vpop.trf.xlu2 }
 0x860   : > { %v3272_v44 = vpop.f32.mrf.mxu3  ;;  %3493 = vxpose.xlu0.b32.cont [10/16] (narrow) %v3191_v41, 8 }
 0x861   : > { %3552 = vxpose.xlu1.b32.cont [5/16] (narrow) %v3272_v44, 8 }
 0x865   : > { %3875 = vmatmul.msk.f32.gmra.mxu3 %vm2567_vm9, %v2556_v12 }
 0x866   : > { %3435 = vxpose.xlu2.b32.end [16/16] (narrow) %v4801_v43, 8  ;;  %v3218_v43 = vpop.f32.mrf.mxu2  ;;  %v2561_v6 = vpop.trf.xlu2 }
 0x868   : > { %v3275_v55 = vpop.f32.mrf.mxu3  ;;  %3494 = vxpose.xlu0.b32.cont [11/16] (narrow) %v3194_v27, 8 }
 0x869   : > { %3553 = vxpose.xlu1.b32.cont [6/16] (narrow) %v3275_v55, 8 }
 0x86d   : > { %3876 = vmatmul.msk.f32.gmra.mxu3 %vm2567_vm9, %v2557_v57 }
 0x86e   : > { %3516 = vxpose.xlu2.b32.start [1/16] (narrow) %v3212_v52, 8  ;;  %v3221_v14 = vpop.f32.mrf.mxu2  ;;  %v2562_v22 = vpop.trf.xlu2 }
 0x870   : > { %v3278_v24 = vpop.f32.mrf.mxu3  ;;  %3495 = vxpose.xlu0.b32.cont [12/16] (narrow) %v3197_v49, 8 }
 0x871   : > { %3554 = vxpose.xlu1.b32.cont [7/16] (narrow) %v3278_v24, 8 }
 0x875   : > { %3877 = vmatmul.msk.f32.gmra.mxu3 %vm2567_vm9, %v2558_v34 }
 0x876   : > { %3517 = vxpose.xlu2.b32.cont [2/16] (narrow) %v3215_v7, 8  ;;  %v2563_v26 = vpop.trf.xlu2 }
 0x878   : > { %v3281_v21 = vpop.f32.mrf.mxu3  ;;  %3496 = vxpose.xlu0.b32.cont [13/16] (narrow) %v3200_v4, 8 }
 0x879   : > { %3555 = vxpose.xlu1.b32.cont [8/16] (narrow) %v3281_v21, 8 }
 0x87d   : > { %3878 = vmatmul.msk.f32.gmra.mxu3 %vm2567_vm9, %v2559_v51 }
 0x87e   : > { %3518 = vxpose.xlu2.b32.cont [3/16] (narrow) %v3218_v43, 8  ;;  %v2564_v23 = vpop.trf.xlu2 }
 0x880   : > { %v3284_v33 = vpop.f32.mrf.mxu3  ;;  %3497 = vxpose.xlu0.b32.cont [14/16] (narrow) %v3203_v20, 8 }
 0x881   : > { %3556 = vxpose.xlu1.b32.cont [9/16] (narrow) %v3284_v33, 8 }
 0x885   : > { %3879 = vmatmul.msk.f32.gmra.mxu3 %vm2567_vm9, %v2560_v62 }
 0x886   : > { %3519 = vxpose.xlu2.b32.cont [4/16] (narrow) %v3221_v14, 8  ;;  %v2565_v30 = vpop.trf.xlu2 }
 0x888   : > { %v3287_v35 = vpop.f32.mrf.mxu3  ;;  %3498 = vxpose.xlu0.b32.cont [15/16] (narrow) %v3206_v28, 8 }
 0x889   : > { %3557 = vxpose.xlu1.b32.cont [10/16] (narrow) %v3287_v35, 8 }
 0x88d   : > { %3880 = vmatmul.msk.f32.gmra.mxu3 %vm2567_vm9, %v2561_v6 }
 0x88e   : > { %3520 = vxpose.xlu2.b32.cont [5/16] (narrow) %v4876_v1, 8  ;;  %v2566_v50 = vpop.trf.xlu2 }
 0x890   : > { %v3290_v42 = vpop.f32.mrf.mxu3  ;;  %3499 = vxpose.xlu0.b32.end [16/16] (narrow) %v3209_v39, 8 }
 0x891   : > { %3558 = vxpose.xlu1.b32.cont [11/16] (narrow) %v3290_v42, 8 }
 0x895   : > { %3881 = vmatmul.msk.f32.gmra.mxu3 %vm2567_vm9, %v2562_v22 }
 0x896   : > { %3521 = vxpose.xlu2.b32.cont [6/16] (narrow) %v4881_v5, 8  ;;  %v3436_v38 = vpop.trf.xlu2 }
 0x897   : > { %3614 = vst [vmem:[%s193_s6 + $0x10] sm:$0xff] %v3436_v38 }
 0x898   : > { %v3293_v16 = vpop.f32.mrf.mxu3 }
 0x899   : > { %3559 = vxpose.xlu1.b32.cont [12/16] (narrow) %v3293_v16, 8 }
 0x89d   : > { %3882 = vmatmul.msk.f32.gmra.mxu3 %vm2567_vm9, %v2563_v26 }
 0x89e   : > { %3522 = vxpose.xlu2.b32.cont [7/16] (narrow) %v4884_v61, 8 }
 0x8a0   : > { %v3296_v18 = vpop.f32.mrf.mxu3 }
 0x8a1   : > { %3560 = vxpose.xlu1.b32.cont [13/16] (narrow) %v3296_v18, 8 }
 0x8a5   : > { %3883 = vmatmul.msk.f32.gmra.mxu3 %vm2567_vm9, %v2564_v23 }
 0x8a6   : > { %3523 = vxpose.xlu2.b32.cont [8/16] (narrow) %v4888_v9, 8 }
 0x8a8   : > { %v3299_v1 = vpop.f32.mrf.mxu3 }
 0x8a9   : > { %3561 = vxpose.xlu1.b32.cont [14/16] (narrow) %v3299_v1, 8 }
 0x8ad   : > { %3884 = vmatmul.msk.f32.gmra.mxu3 %vm2567_vm9, %v2565_v30 }
 0x8ae   : > { %3524 = vxpose.xlu2.b32.cont [9/16] (narrow) %v4891_v40, 8 }
 0x8b0   : > { %v3302_v5 = vpop.f32.mrf.mxu3 }
 0x8b1   : > { %3562 = vxpose.xlu1.b32.cont [15/16] (narrow) %v3302_v5, 8 }
 0x8b5   : > { %3885 = vmatmul.msk.f32.gmra.mxu3 %vm2567_vm9, %v2566_v50 }
 0x8b6   : > { %3525 = vxpose.xlu2.b32.cont [10/16] (narrow) %v4894_v54, 8 }
 0x8b8   : > { %v3305_v61 = vpop.f32.mrf.mxu3 }
 0x8b9   : > { %3563 = vxpose.xlu1.b32.end [16/16] (narrow) %v3305_v61, 8 }
 0x8bc   : > { %v3500_v19 = vpop.trf.xlu0 }
 0x8bd   : > { %3616 = vst [vmem:[%s193_s6 + $0x20] sm:$0xff] %v3500_v19 }
 0x8be   : > { %3526 = vxpose.xlu2.b32.cont [11/16] (narrow) %v4897_v11, 8 }
 0x8c0   : > { %v3308_v60 = vpop.f32.mrf.mxu3 }
 0x8c1   : > { %3580 = vxpose.xlu0.b32.start [1/16] (narrow) %v3308_v60, 8 }
 0x8c6   : > { %3527 = vxpose.xlu2.b32.cont [12/16] (narrow) %v4901_v13, 8 }
 0x8c8   : > { %v3311_v9 = vpop.f32.mrf.mxu3 }
 0x8c9   : > { %3581 = vxpose.xlu0.b32.cont [2/16] (narrow) %v3311_v9, 8 }
 0x8ce   : > { %3528 = vxpose.xlu2.b32.cont [13/16] (narrow) %v4904_v36, 8 }
 0x8d0   : > { %v3314_v40 = vpop.f32.mrf.mxu3 }
 0x8d1   : > { %3582 = vxpose.xlu0.b32.cont [3/16] (narrow) %v3314_v40, 8 }
 0x8d6   : > { %3529 = vxpose.xlu2.b32.cont [14/16] (narrow) %v4908_v45, 8  ;;  %v3468_v45 = vpop.trf.xlu1 }
 0x8d7   : > { %3615 = vst [vmem:[%s193_s6 + $0x18] sm:$0xff] %v3468_v45 }
 0x8d8   : > { %v3317_v56 = vpop.f32.mrf.mxu3 }
 0x8d9   : > { %3583 = vxpose.xlu0.b32.cont [4/16] (narrow) %v3317_v56, 8 }
 0x8de   : > { %3530 = vxpose.xlu2.b32.cont [15/16] (narrow) %v4911_v25, 8 }
 0x8e0   : > { %v3320_v54 = vpop.f32.mrf.mxu3 }
 0x8e1   : > { %3584 = vxpose.xlu0.b32.cont [5/16] (narrow) %v3320_v54, 8 }
 0x8e5   : > { %v3564_v47 = vpop.trf.xlu1 }
 0x8e6   : > { %3531 = vxpose.xlu2.b32.end [16/16] (narrow) %v4917_v2, 8  ;;  %3618 = vst [vmem:[%s193_s6 + $0x30] sm:$0xff] %v3564_v47 }
 0x8e8   : > { %v3323_v11 = vpop.f32.mrf.mxu3 }
 0x8e9   : > { %3585 = vxpose.xlu0.b32.cont [6/16] (narrow) %v3323_v11, 8 }
 0x8f0   : > { %v3326_v15 = vpop.f32.mrf.mxu3 }
 0x8f1   : > { %3586 = vxpose.xlu0.b32.cont [7/16] (narrow) %v3326_v15, 8 }
 0x8f8   : > { %v3329_v13 = vpop.f32.mrf.mxu3 }
 0x8f9   : > { %3587 = vxpose.xlu0.b32.cont [8/16] (narrow) %v3329_v13, 8 }
 0x900   : > { %v3332_v58 = vpop.f32.mrf.mxu3 }
 0x901   : > { %3588 = vxpose.xlu0.b32.cont [9/16] (narrow) %v3332_v58, 8 }
 0x907   : > { %v3532_v25 = vpop.trf.xlu2 }
 0x908   : > { %v3335_v63 = vpop.f32.mrf.mxu3  ;;  %3617 = vst [vmem:[%s193_s6 + $0x28] sm:$0xff] %v3532_v25 }
 0x909   : > { %3589 = vxpose.xlu0.b32.cont [10/16] (narrow) %v3335_v63, 8 }
 0x910   : > { %v3338_v10 = vpop.f32.mrf.mxu3 }
 0x911   : > { %3590 = vxpose.xlu0.b32.cont [11/16] (narrow) %v3338_v10, 8 }
 0x918   : > { %v3341_v36 = vpop.f32.mrf.mxu3 }
 0x919   : > { %3591 = vxpose.xlu0.b32.cont [12/16] (narrow) %v3341_v36, 8 }
 0x920   : > { %v3344_v41 = vpop.f32.mrf.mxu3 }
 0x921   : > { %3592 = vxpose.xlu0.b32.cont [13/16] (narrow) %v3344_v41, 8 }
 0x928   : > { %v3347_v0 = vpop.f32.mrf.mxu3 }
 0x929   : > { %3593 = vxpose.xlu0.b32.cont [14/16] (narrow) %v3347_v0, 8 }
 0x930   : > { %v3350_v27 = vpop.f32.mrf.mxu3 }
 0x931   : > { %3594 = vxpose.xlu0.b32.cont [15/16] (narrow) %v3350_v27, 8 }
 0x938   : > { %v3353_v48 = vpop.f32.mrf.mxu3 }
 0x939   : > { %3595 = vxpose.xlu0.b32.end [16/16] (narrow) %v3353_v48, 8 }
 0x965   : > { %v3596_v32 = vpop.trf.xlu0 }
 0x966   : > { %3619 = vst [vmem:[%s193_s6 + $0x38] sm:$0xff] %v3596_v32 }
 0x967   : > { %3975 = shalt.err (!%p3972_p3)
}
 0x968   : > { %s4021_s30 = smov 256  }
 0x969   : > { %3898 = dma.vmem_to_hbm [thread:$0]  (%p4085_p5), %s3635_s11, 1024, %s3637_s12, %s3621_s13, %s4021_s30, %s4021_s30, %s4019_s23  }
 0x96a PF: > { %p3904_p4 = scmp.ge.s32.totalorder %s4010_s18, 2  ;;  %s3651_s5 = sand.u32 1, %s3998_s15  }
 0x96b   : > { %s3652_s6 = scalar_lea.sflag [#allocation3], %s3651_s5 }
 0x96c   : > { %p3901_p7 = pnand %p3904_p4, %p4089_p6 }
 0x96e   : > { %p3902_p8 = pneg %p3901_p7 }
 0x970   : > { %3993 = dma.done.wait (%p3902_p8), %s3652_s6, 1024  }
 0x971   : > { %3995 = vsyncadd (%p3902_p8), %s3652_s6, 4294966272  ;;  %p14_p9 = scmp.ge.s32.totalorder %s4072_s21, 4   ;;  %s4997_s15 = smov %s4002_s16 }
 0x972   : > { %s4998_s16 = smov %s4006_s17  ;;  %s4999_s17 = smov %s4083_s24 }
 0x973   : > { %s5000_s18 = smov %s4072_s21  ;;  %16 = sbr.rel (!%p14_p9) target bundleno = 3 (0x3), region = 71 }
 0x978   :  { %3658 = vsyncpa [#allocation3], 1 }
 0x979   :  { %3660 = vsyncpa [#allocation3 + $0x1], 1 }

</bundles_post_ra>
